<compile_context>
chip_gen: v7x
topology: tpu7x:2x2x1
jax: 0.10.0
libtpu: 0.0.40
codegen_flags: <defaults>
</compile_context>

<pallas_src>
import functools

import jax
import jax.numpy as jnp
from jax.experimental import pallas as pl
from jax.experimental.pallas import tpu as pltpu


IN_CH = 4
WIDTHS = (8, 16, 32)
NUM_CLASSES = 10


# ------------------------------ fused kernel ------------------------------- #

def _make_msfe_kernel(H, W, in_ch, widths, features_only):
    Wp = W + 2                    # padded row width ('SAME' border)
    P = (H + 2) * Wp              # flattened padded spatial size
    G = 2 * Wp                    # whole-row headroom (>= max tap shift Wp+1)
    E = P + 2 * G                 # zero-extended flattened size
    C0 = in_ch
    C1, C2, C3 = widths

    # Static lane offsets of the 9 shifted windows inside the zero-extended
    # activation: tap (dy, dx) reads padded position p + (dy-1)*Wp + (dx-1).
    shifts = [G + (dy - 1) * Wp + (dx - 1) for dy in range(3) for dx in range(3)]

    def conv_layer(read_win, cin, w_ref, b_ref, col_ref):
        """3x3 'SAME' conv over the flattened padded domain as ONE MXU dot.

        read_win(s) -> (cin, P) bf16 lane-window of the zero-extended activation
        shifted by s.  The 9 windows are packed into the (9*cin, P) im2col
        scratch and contracted against the (cout, 9*cin) reshaped weight.
        Border rows of the (cout, P) f32 result hold wrap garbage; callers mask
        them (layers 1/2), slice them away (features) or zero them through the
        pooling vector (head).
        """
        for t, s in enumerate(shifts):
            col_ref[t * cin:(t + 1) * cin, :] = read_win(s)
        acc = jnp.dot(w_ref[...], col_ref[0:9 * cin, :],
                      preferred_element_type=jnp.float32)          # (cout, P)
        return jnp.maximum(acc + b_ref[...], 0.0)

    def kernel(*refs):
        if features_only:
            (x_ref, mask_ref, w1_ref, b1_ref, w2_ref, b2_ref, w3_ref, b3_ref,
             f1_ref, f2_ref, f3_ref, ext1_ref, ext2_ref, col_ref) = refs
        else:
            (x_ref, mask_ref, pool_ref, w1_ref, b1_ref, w2_ref, b2_ref,
             w3_ref, b3_ref, hwt_ref, hb_ref,
             out_ref, ext1_ref, ext2_ref, col_ref) = refs

        # Zero ONLY the two G-wide headroom bands of the persistent inter-layer
        # scratches (the interior is fully overwritten below): ~90% fewer
        # stores than a full-scratch memset, and correct regardless of how the
        # parallel batch axis is partitioned across TensorCores.
        for scr, c in ((ext1_ref, C1), (ext2_ref, C2)):
            scr[:, :G] = jnp.zeros((c, G), jnp.bfloat16)
            scr[:, G + P:] = jnp.zeros((c, G), jnp.bfloat16)

        mask = mask_ref[...]                                       # (1, P) f32

        # layer 1: reads the zero-extended bf16 NCHW input block directly.
        a1 = conv_layer(lambda s: x_ref[0, :, s:s + P], C0, w1_ref, b1_ref,
                        col_ref) * mask
        ext1_ref[:, G:G + P] = a1.astype(jnp.bfloat16)
        # layer 2: input comes from VMEM scratch, never from HBM.
        a2 = conv_layer(lambda s: ext1_ref[:, s:s + P], C1, w2_ref, b2_ref,
                        col_ref) * mask
        ext2_ref[:, G:G + P] = a2.astype(jnp.bfloat16)
        # layer 3: border garbage is sliced away (features) or zeroed by the
        # pooling mask column (head), so no explicit mask multiply is needed.
        a3 = conv_layer(lambda s: ext2_ref[:, s:s + P], C2, w3_ref, b3_ref,
                        col_ref)

        if features_only:
            f1_ref[0] = a1.astype(f1_ref.dtype)
            f2_ref[0] = a2.astype(f2_ref.dtype)
            f3_ref[0] = a3.astype(f3_ref.dtype)
        else:
            # Fused head: interior masking + global average pool as one
            # (C3, P) x (P, 1) MXU dot, then the tiny f32 linear layer.
            pooled = jnp.dot(a3, pool_ref[...],
                             preferred_element_type=jnp.float32)   # (C3, 1)
            logits = jnp.dot(hwt_ref[...], pooled,
                             preferred_element_type=jnp.float32)   # (K, 1)
            out_ref[0] = logits + hb_ref[...]

    return kernel


# -------------------------------- wrappers --------------------------------- #

def _msfe_pallas(x_nchw, params, features_only):
    N, C0, H, W = x_nchw.shape
    (w1, b1), (w2, b2), (w3, b3) = params["backbone"]
    hw, hb = params["head"]
    C1, C2, C3 = w1.shape[-1], w2.shape[-1], w3.shape[-1]
    K = hw.shape[-1]
    Wp = W + 2
    P = (H + 2) * Wp
    G = 2 * Wp
    E = P + 2 * G
    bf16 = jnp.bfloat16

    # ONE pad (1 'SAME' row/col + 2 whole headroom rows top/bottom, folded into
    # the same pad) and a free reshape; the input stays PyTorch-native NCHW,
    # which is exactly the lane-dense compute layout the kernel uses.
    xp = jnp.pad(x_nchw, ((0, 0), (0, 0), (1 + G // Wp, 1 + G // Wp), (1, 1)))
    x_ext = xp.reshape(N, C0, E).astype(bf16)

    # Interior mask over the padded (H+2, Wp) grid: row form for masking the
    # inter-layer activations, pre-scaled column form for the fused pool dot.
    rr = jnp.arange(H + 2)[:, None]
    cc = jnp.arange(Wp)[None, :]
    interior = ((rr >= 1) & (rr <= H) & (cc >= 1) & (cc <= W)).astype(jnp.float32)
    mask_row = interior.reshape(1, P)
    pool_col = interior.reshape(P, 1) / float(H * W)

    def conv_w(w):   # (3,3,cin,cout) -> (cout, 9*cin), tap-major rows, bf16
        return jnp.transpose(w, (3, 0, 1, 2)).reshape(w.shape[-1], -1).astype(bf16)

    inv2 = lambda n: (0, 0)        # grid-invariant operands stay VMEM-resident
    args = [x_ext, mask_row]
    in_specs = [pl.BlockSpec((1, C0, E), lambda n: (n, 0, 0)),
                pl.BlockSpec((1, P), inv2)]
    if not features_only:
        args += [pool_col]
        in_specs += [pl.BlockSpec((P, 1), inv2)]
    args += [conv_w(w1), b1.reshape(C1, 1), conv_w(w2), b2.reshape(C2, 1),
             conv_w(w3), b3.reshape(C3, 1)]
    in_specs += [pl.BlockSpec((C1, 9 * C0), inv2), pl.BlockSpec((C1, 1), inv2),
                 pl.BlockSpec((C2, 9 * C1), inv2), pl.BlockSpec((C2, 1), inv2),
                 pl.BlockSpec((C3, 9 * C2), inv2), pl.BlockSpec((C3, 1), inv2)]
    if not features_only:
        # Head weight pre-transposed to (K, C3); kept f32 (tiny, more accurate).
        args += [jnp.transpose(hw, (1, 0)).astype(jnp.float32),
                 hb.reshape(K, 1).astype(jnp.float32)]
        in_specs += [pl.BlockSpec((K, C3), inv2), pl.BlockSpec((K, 1), inv2)]

    if features_only:
        # bf16 features halve the only significant HBM writeback in this mode;
        # output blocks are lane-dense (last dim = P) and already NCHW order.
        out_shape = tuple(jax.ShapeDtypeStruct((N, c, P), bf16)
                          for c in (C1, C2, C3))
        out_specs = tuple(pl.BlockSpec((1, c, P), lambda n: (n, 0, 0))
                          for c in (C1, C2, C3))
    else:
        out_shape = jax.ShapeDtypeStruct((N, K, 1), jnp.float32)
        out_specs = pl.BlockSpec((1, K, 1), lambda n: (n, 0, 0))

    scratch_shapes = [
        pltpu.VMEM((C1, E), bf16),                    # zero-extended act 1 -> 2
        pltpu.VMEM((C2, E), bf16),                    # zero-extended act 2 -> 3
        pltpu.VMEM((9 * max(C0, C1, C2), P), bf16),   # shared im2col scratch
    ]

    out = pl.pallas_call(
        _make_msfe_kernel(H, W, C0, (C1, C2, C3), features_only),
        out_shape=out_shape,
        grid=(N,),
        in_specs=in_specs,
        out_specs=out_specs,
        scratch_shapes=scratch_shapes,
        compiler_params=pltpu.CompilerParams(
            dimension_semantics=("parallel",)),
    )(*args)

    if features_only:
        feats = []
        for f in out:
            c = f.shape[1]
            f = f.reshape(N, c, H + 2, Wp)[:, :, 1:H + 1, 1:W + 1]
            feats.append(f)          # already NCHW, bf16 storage dtype
        return feats
    return out.reshape(N, K)


@functools.partial(jax.jit, static_argnames=("features_only",))
def msfe_forward(params, x_nchw, *, features_only=False):
    # TODO(synk): the reference module never defines backbone/head; this uses
    # the synthetic 3x(conv3x3+ReLU) backbone and GAP+Linear head defined above.
    return _msfe_pallas(x_nchw, params, features_only)


# ------------------------------ params & reference ------------------------- #

def init_params(key, in_ch=IN_CH, widths=WIDTHS, num_classes=NUM_CLASSES):
    params = {"backbone": [], "head": None}
    cin = in_ch
    for cout in widths:
        key, kw, kb = jax.random.split(key, 3)
        w = jax.random.normal(kw, (3, 3, cin, cout), jnp.float32) * (2.0 / (9 * cin)) ** 0.5
        b = jax.random.normal(kb, (cout,), jnp.float32) * 0.01
        params["backbone"].append((w, b))
        cin = cout
    key, kw, _ = jax.random.split(key, 3)
    hw = jax.random.normal(kw, (cin, num_classes), jnp.float32) * (1.0 / cin) ** 0.5
    hb = jnp.zeros((num_classes,), jnp.float32)
    params["head"] = (hw, hb)
    return params


def msfe_reference(params, x_nchw):
    """Pure-JAX f32 reference for correctness checking."""
    x = jnp.transpose(x_nchw, (0, 2, 3, 1))
    for w, b in params["backbone"]:
        x = jax.lax.conv_general_dilated(
            x, w, window_strides=(1, 1), padding="SAME",
            dimension_numbers=("NHWC", "HWIO", "NHWC"),
            precision=jax.lax.Precision.HIGHEST)
        x = jnp.maximum(x + b, 0.0)
    hw, hb = params["head"]
    pooled = jnp.mean(x, axis=(1, 2))
    return pooled @ hw + hb


if __name__ == "__main__":
    key = jax.random.PRNGKey(0)
    kp, kx = jax.random.split(key)
    params = init_params(kp)
    x = jax.random.normal(kx, (2, 4, 16, 16), jnp.float32)   # NCHW, like PyTorch

    out = msfe_forward(params, x, features_only=False)
    out = jax.block_until_ready(out)
    assert out.shape == (2, NUM_CLASSES), out.shape

    ref = msfe_reference(params, x)
    max_err = float(jnp.max(jnp.abs(out - ref)))
    # bf16 MXU inputs with f32 accumulation -> ~1e-2-scale absolute error.
    assert jnp.allclose(out, ref, atol=5e-2, rtol=5e-2), f"max abs err {max_err}"

    feats = msfe_forward(params, x, features_only=True)
    feats = jax.block_until_ready(feats)
    assert [f.shape for f in feats] == [(2, 8, 16, 16), (2, 16, 16, 16), (2, 32, 16, 16)], \
        [f.shape for f in feats]

    # Light numerical check of the first feature map (bf16 feature storage +
    # bf16 conv inputs -> loose tolerance; catches geometry/layout bugs).
    xh = jnp.transpose(x, (0, 2, 3, 1))
    w1, b1 = params["backbone"][0]
    ref_f1 = jnp.maximum(jax.lax.conv_general_dilated(
        xh, w1, (1, 1), "SAME", dimension_numbers=("NHWC", "HWIO", "NHWC"),
        precision=jax.lax.Precision.HIGHEST) + b1, 0.0)
    ref_f1 = jnp.transpose(ref_f1, (0, 3, 1, 2))
    f1_err = float(jnp.max(jnp.abs(feats[0].astype(jnp.float32) - ref_f1)))
    assert jnp.allclose(feats[0].astype(jnp.float32), ref_f1,
                        atol=2e-1, rtol=1e-1), f"feature max abs err {f1_err}"

    print("KERNEL_OK")
</pallas_src>

<mosaic_0001>
module attributes {stable_mosaic.version = 11 : i64} {
  func.func @kernel(%arg0: i32, %arg1: memref<1x4x396xbf16, #tpu.memory_space<vmem>>, %arg2: memref<1x324xf32, #tpu.memory_space<vmem>>, %arg3: memref<324x1xf32, #tpu.memory_space<vmem>>, %arg4: memref<8x36xbf16, #tpu.memory_space<vmem>>, %arg5: memref<8x1xf32, #tpu.memory_space<vmem>>, %arg6: memref<16x72xbf16, #tpu.memory_space<vmem>>, %arg7: memref<16x1xf32, #tpu.memory_space<vmem>>, %arg8: memref<32x144xbf16, #tpu.memory_space<vmem>>, %arg9: memref<32x1xf32, #tpu.memory_space<vmem>>, %arg10: memref<10x32xf32, #tpu.memory_space<vmem>>, %arg11: memref<10x1xf32, #tpu.memory_space<vmem>>, %arg12: memref<1x10x1xf32, #tpu.memory_space<vmem>>, %arg13: memref<8x396xbf16, #tpu.memory_space<vmem>>, %arg14: memref<16x396xbf16, #tpu.memory_space<vmem>>, %arg15: memref<144x324xbf16, #tpu.memory_space<vmem>>) attributes {dimension_semantics = [#tpu.dimension_semantics<parallel>], iteration_bounds = array<i64: 2>, scalar_prefetch = 0 : i64, scratch_operands = 3 : i64, tpu.core_type = #tpu.core_type<tc>, window_params = [{transform_indices = @transform_0, window_bounds = array<i64: 1, 4, 396>}, {pipeline_mode = #tpu.pipeline_mode<synchronous>, transform_indices = @transform_1, window_bounds = array<i64: 1, 324>}, {pipeline_mode = #tpu.pipeline_mode<synchronous>, transform_indices = @transform_2, window_bounds = array<i64: 324, 1>}, {pipeline_mode = #tpu.pipeline_mode<synchronous>, transform_indices = @transform_3, window_bounds = array<i64: 8, 36>}, {pipeline_mode = #tpu.pipeline_mode<synchronous>, transform_indices = @transform_4, window_bounds = array<i64: 8, 1>}, {pipeline_mode = #tpu.pipeline_mode<synchronous>, transform_indices = @transform_5, window_bounds = array<i64: 16, 72>}, {pipeline_mode = #tpu.pipeline_mode<synchronous>, transform_indices = @transform_6, window_bounds = array<i64: 16, 1>}, {pipeline_mode = #tpu.pipeline_mode<synchronous>, transform_indices = @transform_7, window_bounds = array<i64: 32, 144>}, {pipeline_mode = #tpu.pipeline_mode<synchronous>, transform_indices = @transform_8, window_bounds = array<i64: 32, 1>}, {pipeline_mode = #tpu.pipeline_mode<synchronous>, transform_indices = @transform_9, window_bounds = array<i64: 10, 32>}, {pipeline_mode = #tpu.pipeline_mode<synchronous>, transform_indices = @transform_10, window_bounds = array<i64: 10, 1>}, {transform_indices = @transform_11, window_bounds = array<i64: 1, 10, 1>}]} {
    %cst = arith.constant 0.000000e+00 : bf16
    %0 = vector.broadcast %cst : bf16 to vector<8x36xbf16>
    %c0 = arith.constant 0 : index
    %c0_0 = arith.constant 0 : index
    %1 = vector.load %arg13[%c0, %c0_0] : memref<8x396xbf16, #tpu.memory_space<vmem>>, vector<8x36xbf16>
    tpu.vector_store %arg13[%c0, %c0_0], %0 {strides = array<i32>} : memref<8x396xbf16, #tpu.memory_space<vmem>>, vector<8x36xbf16>,
    %cst_1 = arith.constant 0.000000e+00 : bf16
    %2 = vector.broadcast %cst_1 : bf16 to vector<8x36xbf16>
    %c0_2 = arith.constant 0 : index
    %c360 = arith.constant 360 : index
    %3 = vector.load %arg13[%c0_2, %c360] : memref<8x396xbf16, #tpu.memory_space<vmem>>, vector<8x36xbf16>
    tpu.vector_store %arg13[%c0_2, %c360], %2 {strides = array<i32>} : memref<8x396xbf16, #tpu.memory_space<vmem>>, vector<8x36xbf16>,
    %cst_3 = arith.constant 0.000000e+00 : bf16
    %4 = vector.broadcast %cst_3 : bf16 to vector<16x36xbf16>
    %c0_4 = arith.constant 0 : index
    %c0_5 = arith.constant 0 : index
    %5 = vector.load %arg14[%c0_4, %c0_5] : memref<16x396xbf16, #tpu.memory_space<vmem>>, vector<16x36xbf16>
    tpu.vector_store %arg14[%c0_4, %c0_5], %4 {strides = array<i32>} : memref<16x396xbf16, #tpu.memory_space<vmem>>, vector<16x36xbf16>,
    %cst_6 = arith.constant 0.000000e+00 : bf16
    %6 = vector.broadcast %cst_6 : bf16 to vector<16x36xbf16>
    %c0_7 = arith.constant 0 : index
    %c360_8 = arith.constant 360 : index
    %7 = vector.load %arg14[%c0_7, %c360_8] : memref<16x396xbf16, #tpu.memory_space<vmem>>, vector<16x36xbf16>
    tpu.vector_store %arg14[%c0_7, %c360_8], %6 {strides = array<i32>} : memref<16x396xbf16, #tpu.memory_space<vmem>>, vector<16x36xbf16>,
    %c0_9 = arith.constant 0 : index
    %c0_10 = arith.constant 0 : index
    %8 = vector.load %arg2[%c0_9, %c0_10] : memref<1x324xf32, #tpu.memory_space<vmem>>, vector<1x324xf32>
    %c0_11 = arith.constant 0 : index
    %c0_12 = arith.constant 0 : index
    %c17 = arith.constant 17 : index
    %9 = vector.load %arg1[%c0_11, %c0_12, %c17] : memref<1x4x396xbf16, #tpu.memory_space<vmem>>, vector<1x4x324xbf16>
    %10 = vector.shape_cast %9 : vector<1x4x324xbf16> to vector<4x324xbf16>
    %c0_13 = arith.constant 0 : index
    %c0_14 = arith.constant 0 : index
    %11 = vector.load %arg15[%c0_13, %c0_14] : memref<144x324xbf16, #tpu.memory_space<vmem>>, vector<4x324xbf16>
    tpu.vector_store %arg15[%c0_13, %c0_14], %10 {strides = array<i32>} : memref<144x324xbf16, #tpu.memory_space<vmem>>, vector<4x324xbf16>,
    %c0_15 = arith.constant 0 : index
    %c0_16 = arith.constant 0 : index
    %c18 = arith.constant 18 : index
    %12 = vector.load %arg1[%c0_15, %c0_16, %c18] : memref<1x4x396xbf16, #tpu.memory_space<vmem>>, vector<1x4x324xbf16>
    %13 = vector.shape_cast %12 : vector<1x4x324xbf16> to vector<4x324xbf16>
    %c4 = arith.constant 4 : index
    %c0_17 = arith.constant 0 : index
    %14 = vector.load %arg15[%c4, %c0_17] : memref<144x324xbf16, #tpu.memory_space<vmem>>, vector<4x324xbf16>
    tpu.vector_store %arg15[%c4, %c0_17], %13 {strides = array<i32>} : memref<144x324xbf16, #tpu.memory_space<vmem>>, vector<4x324xbf16>,
    %c0_18 = arith.constant 0 : index
    %c0_19 = arith.constant 0 : index
    %c19 = arith.constant 19 : index
    %15 = vector.load %arg1[%c0_18, %c0_19, %c19] : memref<1x4x396xbf16, #tpu.memory_space<vmem>>, vector<1x4x324xbf16>
    %16 = vector.shape_cast %15 : vector<1x4x324xbf16> to vector<4x324xbf16>
    %c8 = arith.constant 8 : index
    %c0_20 = arith.constant 0 : index
    %17 = vector.load %arg15[%c8, %c0_20] : memref<144x324xbf16, #tpu.memory_space<vmem>>, vector<4x324xbf16>
    tpu.vector_store %arg15[%c8, %c0_20], %16 {strides = array<i32>} : memref<144x324xbf16, #tpu.memory_space<vmem>>, vector<4x324xbf16>,
    %c0_21 = arith.constant 0 : index
    %c0_22 = arith.constant 0 : index
    %c35 = arith.constant 35 : index
    %18 = vector.load %arg1[%c0_21, %c0_22, %c35] : memref<1x4x396xbf16, #tpu.memory_space<vmem>>, vector<1x4x324xbf16>
    %19 = vector.shape_cast %18 : vector<1x4x324xbf16> to vector<4x324xbf16>
    %c12 = arith.constant 12 : index
    %c0_23 = arith.constant 0 : index
    %20 = vector.load %arg15[%c12, %c0_23] : memref<144x324xbf16, #tpu.memory_space<vmem>>, vector<4x324xbf16>
    tpu.vector_store %arg15[%c12, %c0_23], %19 {strides = array<i32>} : memref<144x324xbf16, #tpu.memory_space<vmem>>, vector<4x324xbf16>,
    %c0_24 = arith.constant 0 : index
    %c0_25 = arith.constant 0 : index
    %c36 = arith.constant 36 : index
    %21 = vector.load %arg1[%c0_24, %c0_25, %c36] : memref<1x4x396xbf16, #tpu.memory_space<vmem>>, vector<1x4x324xbf16>
    %22 = vector.shape_cast %21 : vector<1x4x324xbf16> to vector<4x324xbf16>
    %c16 = arith.constant 16 : index
    %c0_26 = arith.constant 0 : index
    %23 = vector.load %arg15[%c16, %c0_26] : memref<144x324xbf16, #tpu.memory_space<vmem>>, vector<4x324xbf16>
    tpu.vector_store %arg15[%c16, %c0_26], %22 {strides = array<i32>} : memref<144x324xbf16, #tpu.memory_space<vmem>>, vector<4x324xbf16>,
    %c0_27 = arith.constant 0 : index
    %c0_28 = arith.constant 0 : index
    %c37 = arith.constant 37 : index
    %24 = vector.load %arg1[%c0_27, %c0_28, %c37] : memref<1x4x396xbf16, #tpu.memory_space<vmem>>, vector<1x4x324xbf16>
    %25 = vector.shape_cast %24 : vector<1x4x324xbf16> to vector<4x324xbf16>
    %c20 = arith.constant 20 : index
    %c0_29 = arith.constant 0 : index
    %26 = vector.load %arg15[%c20, %c0_29] : memref<144x324xbf16, #tpu.memory_space<vmem>>, vector<4x324xbf16>
    tpu.vector_store %arg15[%c20, %c0_29], %25 {strides = array<i32>} : memref<144x324xbf16, #tpu.memory_space<vmem>>, vector<4x324xbf16>,
    %c0_30 = arith.constant 0 : index
    %c0_31 = arith.constant 0 : index
    %c53 = arith.constant 53 : index
    %27 = vector.load %arg1[%c0_30, %c0_31, %c53] : memref<1x4x396xbf16, #tpu.memory_space<vmem>>, vector<1x4x324xbf16>
    %28 = vector.shape_cast %27 : vector<1x4x324xbf16> to vector<4x324xbf16>
    %c24 = arith.constant 24 : index
    %c0_32 = arith.constant 0 : index
    %29 = vector.load %arg15[%c24, %c0_32] : memref<144x324xbf16, #tpu.memory_space<vmem>>, vector<4x324xbf16>
    tpu.vector_store %arg15[%c24, %c0_32], %28 {strides = array<i32>} : memref<144x324xbf16, #tpu.memory_space<vmem>>, vector<4x324xbf16>,
    %c0_33 = arith.constant 0 : index
    %c0_34 = arith.constant 0 : index
    %c54 = arith.constant 54 : index
    %30 = vector.load %arg1[%c0_33, %c0_34, %c54] : memref<1x4x396xbf16, #tpu.memory_space<vmem>>, vector<1x4x324xbf16>
    %31 = vector.shape_cast %30 : vector<1x4x324xbf16> to vector<4x324xbf16>
    %c28 = arith.constant 28 : index
    %c0_35 = arith.constant 0 : index
    %32 = vector.load %arg15[%c28, %c0_35] : memref<144x324xbf16, #tpu.memory_space<vmem>>, vector<4x324xbf16>
    tpu.vector_store %arg15[%c28, %c0_35], %31 {strides = array<i32>} : memref<144x324xbf16, #tpu.memory_space<vmem>>, vector<4x324xbf16>,
    %c0_36 = arith.constant 0 : index
    %c0_37 = arith.constant 0 : index
    %c55 = arith.constant 55 : index
    %33 = vector.load %arg1[%c0_36, %c0_37, %c55] : memref<1x4x396xbf16, #tpu.memory_space<vmem>>, vector<1x4x324xbf16>
    %34 = vector.shape_cast %33 : vector<1x4x324xbf16> to vector<4x324xbf16>
    %c32 = arith.constant 32 : index
    %c0_38 = arith.constant 0 : index
    %35 = vector.load %arg15[%c32, %c0_38] : memref<144x324xbf16, #tpu.memory_space<vmem>>, vector<4x324xbf16>
    tpu.vector_store %arg15[%c32, %c0_38], %34 {strides = array<i32>} : memref<144x324xbf16, #tpu.memory_space<vmem>>, vector<4x324xbf16>,
    %c0_39 = arith.constant 0 : index
    %c0_40 = arith.constant 0 : index
    %36 = vector.load %arg4[%c0_39, %c0_40] : memref<8x36xbf16, #tpu.memory_space<vmem>>, vector<8x36xbf16>
    %c0_41 = arith.constant 0 : index
    %c0_42 = arith.constant 0 : index
    %37 = vector.load %arg15[%c0_41, %c0_42] : memref<144x324xbf16, #tpu.memory_space<vmem>>, vector<36x324xbf16>
    %cst_43 = arith.constant dense<0.000000e+00> : vector<8x324xf32>
    %38 = tpu.matmul %36, %37, %cst_43 {dimension_numbers = #tpu.dot_dimension_numbers<[1], [0], [0], [1], [0, 0, 1, 1], [], []>} : vector<8x36xbf16>, vector<36x324xbf16>, vector<8x324xf32> -> vector<8x324xf32>
    %c0_44 = arith.constant 0 : index
    %c0_45 = arith.constant 0 : index
    %39 = vector.load %arg5[%c0_44, %c0_45] : memref<8x1xf32, #tpu.memory_space<vmem>>, vector<8x1xf32>
    %40 = vector.broadcast %39 : vector<8x1xf32> to vector<8x324xf32>
    %41 = arith.addf %38, %40 : vector<8x324xf32>
    %cst_46 = arith.constant 0.000000e+00 : f32
    %42 = vector.broadcast %cst_46 : f32 to vector<8x324xf32>
    %43 = arith.maximumf %41, %42 : vector<8x324xf32>
    %44 = vector.broadcast %8 : vector<1x324xf32> to vector<8x324xf32>
    %45 = arith.mulf %43, %44 : vector<8x324xf32>
    %46 = arith.truncf %45 : vector<8x324xf32> to vector<8x324xbf16>
    %c0_47 = arith.constant 0 : index
    %c36_48 = arith.constant 36 : index
    %47 = vector.load %arg13[%c0_47, %c36_48] : memref<8x396xbf16, #tpu.memory_space<vmem>>, vector<8x324xbf16>
    tpu.vector_store %arg13[%c0_47, %c36_48], %46 {strides = array<i32>} : memref<8x396xbf16, #tpu.memory_space<vmem>>, vector<8x324xbf16>,
    %c0_49 = arith.constant 0 : index
    %c17_50 = arith.constant 17 : index
    %48 = vector.load %arg13[%c0_49, %c17_50] : memref<8x396xbf16, #tpu.memory_space<vmem>>, vector<8x324xbf16>
    %c0_51 = arith.constant 0 : index
    %c0_52 = arith.constant 0 : index
    %49 = vector.load %arg15[%c0_51, %c0_52] : memref<144x324xbf16, #tpu.memory_space<vmem>>, vector<8x324xbf16>
    tpu.vector_store %arg15[%c0_51, %c0_52], %48 {strides = array<i32>} : memref<144x324xbf16, #tpu.memory_space<vmem>>, vector<8x324xbf16>,
    %c0_53 = arith.constant 0 : index
    %c18_54 = arith.constant 18 : index
    %50 = vector.load %arg13[%c0_53, %c18_54] : memref<8x396xbf16, #tpu.memory_space<vmem>>, vector<8x324xbf16>
    %c8_55 = arith.constant 8 : index
    %c0_56 = arith.constant 0 : index
    %51 = vector.load %arg15[%c8_55, %c0_56] : memref<144x324xbf16, #tpu.memory_space<vmem>>, vector<8x324xbf16>
    tpu.vector_store %arg15[%c8_55, %c0_56], %50 {strides = array<i32>} : memref<144x324xbf16, #tpu.memory_space<vmem>>, vector<8x324xbf16>,
    %c0_57 = arith.constant 0 : index
    %c19_58 = arith.constant 19 : index
    %52 = vector.load %arg13[%c0_57, %c19_58] : memref<8x396xbf16, #tpu.memory_space<vmem>>, vector<8x324xbf16>
    %c16_59 = arith.constant 16 : index
    %c0_60 = arith.constant 0 : index
    %53 = vector.load %arg15[%c16_59, %c0_60] : memref<144x324xbf16, #tpu.memory_space<vmem>>, vector<8x324xbf16>
    tpu.vector_store %arg15[%c16_59, %c0_60], %52 {strides = array<i32>} : memref<144x324xbf16, #tpu.memory_space<vmem>>, vector<8x324xbf16>,
    %c0_61 = arith.constant 0 : index
    %c35_62 = arith.constant 35 : index
    %54 = vector.load %arg13[%c0_61, %c35_62] : memref<8x396xbf16, #tpu.memory_space<vmem>>, vector<8x324xbf16>
    %c24_63 = arith.constant 24 : index
    %c0_64 = arith.constant 0 : index
    %55 = vector.load %arg15[%c24_63, %c0_64] : memref<144x324xbf16, #tpu.memory_space<vmem>>, vector<8x324xbf16>
    tpu.vector_store %arg15[%c24_63, %c0_64], %54 {strides = array<i32>} : memref<144x324xbf16, #tpu.memory_space<vmem>>, vector<8x324xbf16>,
    %c0_65 = arith.constant 0 : index
    %c36_66 = arith.constant 36 : index
    %56 = vector.load %arg13[%c0_65, %c36_66] : memref<8x396xbf16, #tpu.memory_space<vmem>>, vector<8x324xbf16>
    %c32_67 = arith.constant 32 : index
    %c0_68 = arith.constant 0 : index
    %57 = vector.load %arg15[%c32_67, %c0_68] : memref<144x324xbf16, #tpu.memory_space<vmem>>, vector<8x324xbf16>
    tpu.vector_store %arg15[%c32_67, %c0_68], %56 {strides = array<i32>} : memref<144x324xbf16, #tpu.memory_space<vmem>>, vector<8x324xbf16>,
    %c0_69 = arith.constant 0 : index
    %c37_70 = arith.constant 37 : index
    %58 = vector.load %arg13[%c0_69, %c37_70] : memref<8x396xbf16, #tpu.memory_space<vmem>>, vector<8x324xbf16>
    %c40 = arith.constant 40 : index
    %c0_71 = arith.constant 0 : index
    %59 = vector.load %arg15[%c40, %c0_71] : memref<144x324xbf16, #tpu.memory_space<vmem>>, vector<8x324xbf16>
    tpu.vector_store %arg15[%c40, %c0_71], %58 {strides = array<i32>} : memref<144x324xbf16, #tpu.memory_space<vmem>>, vector<8x324xbf16>,
    %c0_72 = arith.constant 0 : index
    %c53_73 = arith.constant 53 : index
    %60 = vector.load %arg13[%c0_72, %c53_73] : memref<8x396xbf16, #tpu.memory_space<vmem>>, vector<8x324xbf16>
    %c48 = arith.constant 48 : index
    %c0_74 = arith.constant 0 : index
    %61 = vector.load %arg15[%c48, %c0_74] : memref<144x324xbf16, #tpu.memory_space<vmem>>, vector<8x324xbf16>
    tpu.vector_store %arg15[%c48, %c0_74], %60 {strides = array<i32>} : memref<144x324xbf16, #tpu.memory_space<vmem>>, vector<8x324xbf16>,
    %c0_75 = arith.constant 0 : index
    %c54_76 = arith.constant 54 : index
    %62 = vector.load %arg13[%c0_75, %c54_76] : memref<8x396xbf16, #tpu.memory_space<vmem>>, vector<8x324xbf16>
    %c56 = arith.constant 56 : index
    %c0_77 = arith.constant 0 : index
    %63 = vector.load %arg15[%c56, %c0_77] : memref<144x324xbf16, #tpu.memory_space<vmem>>, vector<8x324xbf16>
    tpu.vector_store %arg15[%c56, %c0_77], %62 {strides = array<i32>} : memref<144x324xbf16, #tpu.memory_space<vmem>>, vector<8x324xbf16>,
    %c0_78 = arith.constant 0 : index
    %c55_79 = arith.constant 55 : index
    %64 = vector.load %arg13[%c0_78, %c55_79] : memref<8x396xbf16, #tpu.memory_space<vmem>>, vector<8x324xbf16>
    %c64 = arith.constant 64 : index
    %c0_80 = arith.constant 0 : index
    %65 = vector.load %arg15[%c64, %c0_80] : memref<144x324xbf16, #tpu.memory_space<vmem>>, vector<8x324xbf16>
    tpu.vector_store %arg15[%c64, %c0_80], %64 {strides = array<i32>} : memref<144x324xbf16, #tpu.memory_space<vmem>>, vector<8x324xbf16>,
    %c0_81 = arith.constant 0 : index
    %c0_82 = arith.constant 0 : index
    %66 = vector.load %arg6[%c0_81, %c0_82] : memref<16x72xbf16, #tpu.memory_space<vmem>>, vector<16x72xbf16>
    %c0_83 = arith.constant 0 : index
    %c0_84 = arith.constant 0 : index
    %67 = vector.load %arg15[%c0_83, %c0_84] : memref<144x324xbf16, #tpu.memory_space<vmem>>, vector<72x324xbf16>
    %cst_85 = arith.constant dense<0.000000e+00> : vector<16x324xf32>
    %68 = tpu.matmul %66, %67, %cst_85 {dimension_numbers = #tpu.dot_dimension_numbers<[1], [0], [0], [1], [0, 0, 1, 1], [], []>} : vector<16x72xbf16>, vector<72x324xbf16>, vector<16x324xf32> -> vector<16x324xf32>
    %c0_86 = arith.constant 0 : index
    %c0_87 = arith.constant 0 : index
    %69 = vector.load %arg7[%c0_86, %c0_87] : memref<16x1xf32, #tpu.memory_space<vmem>>, vector<16x1xf32>
    %70 = vector.broadcast %69 : vector<16x1xf32> to vector<16x324xf32>
    %71 = arith.addf %68, %70 : vector<16x324xf32>
    %cst_88 = arith.constant 0.000000e+00 : f32
    %72 = vector.broadcast %cst_88 : f32 to vector<16x324xf32>
    %73 = arith.maximumf %71, %72 : vector<16x324xf32>
    %74 = vector.broadcast %8 : vector<1x324xf32> to vector<16x324xf32>
    %75 = arith.mulf %73, %74 : vector<16x324xf32>
    %76 = arith.truncf %75 : vector<16x324xf32> to vector<16x324xbf16>
    %c0_89 = arith.constant 0 : index
    %c36_90 = arith.constant 36 : index
    %77 = vector.load %arg14[%c0_89, %c36_90] : memref<16x396xbf16, #tpu.memory_space<vmem>>, vector<16x324xbf16>
    tpu.vector_store %arg14[%c0_89, %c36_90], %76 {strides = array<i32>} : memref<16x396xbf16, #tpu.memory_space<vmem>>, vector<16x324xbf16>,
    %c0_91 = arith.constant 0 : index
    %c17_92 = arith.constant 17 : index
    %78 = vector.load %arg14[%c0_91, %c17_92] : memref<16x396xbf16, #tpu.memory_space<vmem>>, vector<16x324xbf16>
    %c0_93 = arith.constant 0 : index
    %c0_94 = arith.constant 0 : index
    %79 = vector.load %arg15[%c0_93, %c0_94] : memref<144x324xbf16, #tpu.memory_space<vmem>>, vector<16x324xbf16>
    tpu.vector_store %arg15[%c0_93, %c0_94], %78 {strides = array<i32>} : memref<144x324xbf16, #tpu.memory_space<vmem>>, vector<16x324xbf16>,
    %c0_95 = arith.constant 0 : index
    %c18_96 = arith.constant 18 : index
    %80 = vector.load %arg14[%c0_95, %c18_96] : memref<16x396xbf16, #tpu.memory_space<vmem>>, vector<16x324xbf16>
    %c16_97 = arith.constant 16 : index
    %c0_98 = arith.constant 0 : index
    %81 = vector.load %arg15[%c16_97, %c0_98] : memref<144x324xbf16, #tpu.memory_space<vmem>>, vector<16x324xbf16>
    tpu.vector_store %arg15[%c16_97, %c0_98], %80 {strides = array<i32>} : memref<144x324xbf16, #tpu.memory_space<vmem>>, vector<16x324xbf16>,
    %c0_99 = arith.constant 0 : index
    %c19_100 = arith.constant 19 : index
    %82 = vector.load %arg14[%c0_99, %c19_100] : memref<16x396xbf16, #tpu.memory_space<vmem>>, vector<16x324xbf16>
    %c32_101 = arith.constant 32 : index
    %c0_102 = arith.constant 0 : index
    %83 = vector.load %arg15[%c32_101, %c0_102] : memref<144x324xbf16, #tpu.memory_space<vmem>>, vector<16x324xbf16>
    tpu.vector_store %arg15[%c32_101, %c0_102], %82 {strides = array<i32>} : memref<144x324xbf16, #tpu.memory_space<vmem>>, vector<16x324xbf16>,
    %c0_103 = arith.constant 0 : index
    %c35_104 = arith.constant 35 : index
    %84 = vector.load %arg14[%c0_103, %c35_104] : memref<16x396xbf16, #tpu.memory_space<vmem>>, vector<16x324xbf16>
    %c48_105 = arith.constant 48 : index
    %c0_106 = arith.constant 0 : index
    %85 = vector.load %arg15[%c48_105, %c0_106] : memref<144x324xbf16, #tpu.memory_space<vmem>>, vector<16x324xbf16>
    tpu.vector_store %arg15[%c48_105, %c0_106], %84 {strides = array<i32>} : memref<144x324xbf16, #tpu.memory_space<vmem>>, vector<16x324xbf16>,
    %c0_107 = arith.constant 0 : index
    %c36_108 = arith.constant 36 : index
    %86 = vector.load %arg14[%c0_107, %c36_108] : memref<16x396xbf16, #tpu.memory_space<vmem>>, vector<16x324xbf16>
    %c64_109 = arith.constant 64 : index
    %c0_110 = arith.constant 0 : index
    %87 = vector.load %arg15[%c64_109, %c0_110] : memref<144x324xbf16, #tpu.memory_space<vmem>>, vector<16x324xbf16>
    tpu.vector_store %arg15[%c64_109, %c0_110], %86 {strides = array<i32>} : memref<144x324xbf16, #tpu.memory_space<vmem>>, vector<16x324xbf16>,
    %c0_111 = arith.constant 0 : index
    %c37_112 = arith.constant 37 : index
    %88 = vector.load %arg14[%c0_111, %c37_112] : memref<16x396xbf16, #tpu.memory_space<vmem>>, vector<16x324xbf16>
    %c80 = arith.constant 80 : index
    %c0_113 = arith.constant 0 : index
    %89 = vector.load %arg15[%c80, %c0_113] : memref<144x324xbf16, #tpu.memory_space<vmem>>, vector<16x324xbf16>
    tpu.vector_store %arg15[%c80, %c0_113], %88 {strides = array<i32>} : memref<144x324xbf16, #tpu.memory_space<vmem>>, vector<16x324xbf16>,
    %c0_114 = arith.constant 0 : index
    %c53_115 = arith.constant 53 : index
    %90 = vector.load %arg14[%c0_114, %c53_115] : memref<16x396xbf16, #tpu.memory_space<vmem>>, vector<16x324xbf16>
    %c96 = arith.constant 96 : index
    %c0_116 = arith.constant 0 : index
    %91 = vector.load %arg15[%c96, %c0_116] : memref<144x324xbf16, #tpu.memory_space<vmem>>, vector<16x324xbf16>
    tpu.vector_store %arg15[%c96, %c0_116], %90 {strides = array<i32>} : memref<144x324xbf16, #tpu.memory_space<vmem>>, vector<16x324xbf16>,
    %c0_117 = arith.constant 0 : index
    %c54_118 = arith.constant 54 : index
    %92 = vector.load %arg14[%c0_117, %c54_118] : memref<16x396xbf16, #tpu.memory_space<vmem>>, vector<16x324xbf16>
    %c112 = arith.constant 112 : index
    %c0_119 = arith.constant 0 : index
    %93 = vector.load %arg15[%c112, %c0_119] : memref<144x324xbf16, #tpu.memory_space<vmem>>, vector<16x324xbf16>
    tpu.vector_store %arg15[%c112, %c0_119], %92 {strides = array<i32>} : memref<144x324xbf16, #tpu.memory_space<vmem>>, vector<16x324xbf16>,
    %c0_120 = arith.constant 0 : index
    %c55_121 = arith.constant 55 : index
    %94 = vector.load %arg14[%c0_120, %c55_121] : memref<16x396xbf16, #tpu.memory_space<vmem>>, vector<16x324xbf16>
    %c128 = arith.constant 128 : index
    %c0_122 = arith.constant 0 : index
    %95 = vector.load %arg15[%c128, %c0_122] : memref<144x324xbf16, #tpu.memory_space<vmem>>, vector<16x324xbf16>
    tpu.vector_store %arg15[%c128, %c0_122], %94 {strides = array<i32>} : memref<144x324xbf16, #tpu.memory_space<vmem>>, vector<16x324xbf16>,
    %c0_123 = arith.constant 0 : index
    %c0_124 = arith.constant 0 : index
    %96 = vector.load %arg8[%c0_123, %c0_124] : memref<32x144xbf16, #tpu.memory_space<vmem>>, vector<32x144xbf16>
    %c0_125 = arith.constant 0 : index
    %c0_126 = arith.constant 0 : index
    %97 = vector.load %arg15[%c0_125, %c0_126] : memref<144x324xbf16, #tpu.memory_space<vmem>>, vector<144x324xbf16>
    %cst_127 = arith.constant dense<0.000000e+00> : vector<32x324xf32>
    %98 = tpu.matmul %96, %97, %cst_127 {dimension_numbers = #tpu.dot_dimension_numbers<[1], [0], [0], [1], [0, 0, 1, 1], [], []>} : vector<32x144xbf16>, vector<144x324xbf16>, vector<32x324xf32> -> vector<32x324xf32>
    %c0_128 = arith.constant 0 : index
    %c0_129 = arith.constant 0 : index
    %99 = vector.load %arg9[%c0_128, %c0_129] : memref<32x1xf32, #tpu.memory_space<vmem>>, vector<32x1xf32>
    %100 = vector.broadcast %99 : vector<32x1xf32> to vector<32x324xf32>
    %101 = arith.addf %98, %100 : vector<32x324xf32>
    %cst_130 = arith.constant 0.000000e+00 : f32
    %102 = vector.broadcast %cst_130 : f32 to vector<32x324xf32>
    %103 = arith.maximumf %101, %102 : vector<32x324xf32>
    %c0_131 = arith.constant 0 : index
    %c0_132 = arith.constant 0 : index
    %104 = vector.load %arg3[%c0_131, %c0_132] : memref<324x1xf32, #tpu.memory_space<vmem>>, vector<324x1xf32>
    %cst_133 = arith.constant dense<0.000000e+00> : vector<32x1xf32>
    %105 = tpu.matmul %103, %104, %cst_133 {dimension_numbers = #tpu.dot_dimension_numbers<[1], [0], [0], [1], [0, 0, 1, 1], [], []>} : vector<32x324xf32>, vector<324x1xf32>, vector<32x1xf32> -> vector<32x1xf32>
    %c0_134 = arith.constant 0 : index
    %c0_135 = arith.constant 0 : index
    %106 = vector.load %arg10[%c0_134, %c0_135] : memref<10x32xf32, #tpu.memory_space<vmem>>, vector<10x32xf32>
    %cst_136 = arith.constant dense<0.000000e+00> : vector<10x1xf32>
    %107 = tpu.matmul %106, %105, %cst_136 {dimension_numbers = #tpu.dot_dimension_numbers<[1], [0], [0], [1], [0, 0, 1, 1], [], []>} : vector<10x32xf32>, vector<32x1xf32>, vector<10x1xf32> -> vector<10x1xf32>
    %c0_137 = arith.constant 0 : index
    %c0_138 = arith.constant 0 : index
    %108 = vector.load %arg11[%c0_137, %c0_138] : memref<10x1xf32, #tpu.memory_space<vmem>>, vector<10x1xf32>
    %109 = arith.addf %107, %108 : vector<10x1xf32>
    %c0_139 = arith.constant 0 : index
    %c0_140 = arith.constant 0 : index
    %c0_141 = arith.constant 0 : index
    %110 = vector.load %arg12[%c0_139, %c0_140, %c0_141] : memref<1x10x1xf32, #tpu.memory_space<vmem>>, vector<1x10x1xf32>
    %111 = vector.shape_cast %110 : vector<1x10x1xf32> to vector<10x1xf32>
    %112 = vector.shape_cast %109 : vector<10x1xf32> to vector<1x10x1xf32>
    tpu.vector_store %arg12[%c0_139, %c0_140, %c0_141], %112 {strides = array<i32>} : memref<1x10x1xf32, #tpu.memory_space<vmem>>, vector<1x10x1xf32>,
    return
  }
  func.func @transform_0(%arg0: i32) -> (i32, i32, i32) {
    %c0_i32 = arith.constant 0 : i32
    %c0_i32_0 = arith.constant 0 : i32
    %c0_i32_1 = arith.constant 0 : i32
    return %arg0, %c0_i32, %c0_i32_0 : i32, i32, i32
  }
  func.func @transform_1(%arg0: i32) -> (i32, i32) {
    %c0_i32 = arith.constant 0 : i32
    %c0_i32_0 = arith.constant 0 : i32
    %c0_i32_1 = arith.constant 0 : i32
    return %c0_i32, %c0_i32_0 : i32, i32
  }
  func.func @transform_2(%arg0: i32) -> (i32, i32) {
    %c0_i32 = arith.constant 0 : i32
    %c0_i32_0 = arith.constant 0 : i32
    %c0_i32_1 = arith.constant 0 : i32
    return %c0_i32, %c0_i32_0 : i32, i32
  }
  func.func @transform_3(%arg0: i32) -> (i32, i32) {
    %c0_i32 = arith.constant 0 : i32
    %c0_i32_0 = arith.constant 0 : i32
    %c0_i32_1 = arith.constant 0 : i32
    return %c0_i32, %c0_i32_0 : i32, i32
  }
  func.func @transform_4(%arg0: i32) -> (i32, i32) {
    %c0_i32 = arith.constant 0 : i32
    %c0_i32_0 = arith.constant 0 : i32
    %c0_i32_1 = arith.constant 0 : i32
    return %c0_i32, %c0_i32_0 : i32, i32
  }
  func.func @transform_5(%arg0: i32) -> (i32, i32) {
    %c0_i32 = arith.constant 0 : i32
    %c0_i32_0 = arith.constant 0 : i32
    %c0_i32_1 = arith.constant 0 : i32
    return %c0_i32, %c0_i32_0 : i32, i32
  }
  func.func @transform_6(%arg0: i32) -> (i32, i32) {
    %c0_i32 = arith.constant 0 : i32
    %c0_i32_0 = arith.constant 0 : i32
    %c0_i32_1 = arith.constant 0 : i32
    return %c0_i32, %c0_i32_0 : i32, i32
  }
  func.func @transform_7(%arg0: i32) -> (i32, i32) {
    %c0_i32 = arith.constant 0 : i32
    %c0_i32_0 = arith.constant 0 : i32
    %c0_i32_1 = arith.constant 0 : i32
    return %c0_i32, %c0_i32_0 : i32, i32
  }
  func.func @transform_8(%arg0: i32) -> (i32, i32) {
    %c0_i32 = arith.constant 0 : i32
    %c0_i32_0 = arith.constant 0 : i32
    %c0_i32_1 = arith.constant 0 : i32
    return %c0_i32, %c0_i32_0 : i32, i32
  }
  func.func @transform_9(%arg0: i32) -> (i32, i32) {
    %c0_i32 = arith.constant 0 : i32
    %c0_i32_0 = arith.constant 0 : i32
    %c0_i32_1 = arith.constant 0 : i32
    return %c0_i32, %c0_i32_0 : i32, i32
  }
  func.func @transform_10(%arg0: i32) -> (i32, i32) {
    %c0_i32 = arith.constant 0 : i32
    %c0_i32_0 = arith.constant 0 : i32
    %c0_i32_1 = arith.constant 0 : i32
    return %c0_i32, %c0_i32_0 : i32, i32
  }
  func.func @transform_11(%arg0: i32) -> (i32, i32, i32) {
    %c0_i32 = arith.constant 0 : i32
    %c0_i32_0 = arith.constant 0 : i32
    %c0_i32_1 = arith.constant 0 : i32
    return %arg0, %c0_i32, %c0_i32_0 : i32, i32, i32
  }
}

</mosaic_0001>

<bundles_post_ra>
// kernel: msfe_forward.1
= control target key start
LH: loop header
LB: loop body
LE: loop exit
PB: predicated region body
PF: predicated region fallthrough
CT: control target
= control target key end

     0   :  { %s2382_s17 = smov 0   ;;  %s2860_s0 = inlined_call_operand.vmem [shape: bf16[2,4,396], index: 0, kind: input, shape index: {}]   ;;  %s2861_s1 = inlined_call_operand.vmem [shape: f32[1,324], index: 1, kind: input, shape index: {}]   ;;  %s2862_s2 = inlined_call_operand.vmem [shape: f32[324,1], index: 2, kind: input, shape index: {}]   ;;  %s2863_s3 = inlined_call_operand.vmem [shape: bf16[8,36], index: 3, kind: input, shape index: {}]   ;;  %s2864_s4 = inlined_call_operand.vmem [shape: f32[8,1], index: 4, kind: input, shape index: {}]   ;;  %s2865_s5 = inlined_call_operand.vmem [shape: bf16[16,72], index: 5, kind: input, shape index: {}]   ;;  %s2866_s6 = inlined_call_operand.vmem [shape: f32[16,1], index: 6, kind: input, shape index: {}]   ;;  %s2867_s7 = inlined_call_operand.vmem [shape: bf16[32,144], index: 7, kind: input, shape index: {}]   ;;  %s2868_s8 = inlined_call_operand.vmem [shape: f32[32,1], index: 8, kind: input, shape index: {}]   ;;  %s2869_s9 = inlined_call_operand.vmem [shape: f32[10,32], index: 9, kind: input, shape index: {}]   ;;  %s2870_s10 = inlined_call_operand.vmem [shape: f32[10,1], index: 10, kind: input, shape index: {}]   ;;  %s2871_s11 = inlined_call_operand.vmem [shape: f32[2,10,1], index: 11, kind: output, shape index: {}]  }
   0x1 LB: > { %s1995_s18 = sadd.s32 4294967295, %s2306_s17   ;;  %p1999_p0 = scmp.ge.s32.totalorder %s2306_s17, 1  ;;  %s2306_s17 = sphi %s2382_s17, %s21_s17  }
   0x2   : > { %p337_p1 = scmp.lt.s32.totalorder %s2306_s17, 3 }
   0x4   : > { %p338_p2 = pnand %p1999_p0, %p337_p1 }
   0x5   : > { %p377_p3 = scmp.lt.s32.totalorder (!%p338_p2), %s1995_s18, 1  ;;  %v407_v0 = vlaneseq (!%p338_p2)  ;;  %v2308_v1 = vmov (!%p338_p2), 1983009808   ;;  %s2309_s23 = smov (!%p338_p2), 109   ;;  %vm394_vm0 = vcmask (!%p338_p2), 293888   ;;  %v2318_v55 = vmov (!%p338_p2), 0  }
   0x6   : > { %341 = sbr.rel (%p338_p2) target bundleno = 1914 (0x77a), region = 64  ;;  %v405_v2 = vunpack.c.l.s4 (!%p338_p2), %v2308_v1  ;;  %s2310_s24 = smov (!%p338_p2), 110   ;;  %767 = vmatprep.mubr.bf16.mxu1 (!%p338_p2), %v2318_v55  ;;  %395 = vst.msk [vmem:[#allocation3] sm:$0xff] (!%p338_p2), %vm394_vm0, %v2318_v55  ;;  %2271 = vset.pattern.permute.xlu1 (!%p338_p2), %v2318_v55  ;;  %v716_v56 = vld [vmem:[%s2864_s4] sm:$0xff] (!%p338_p2)  ;;  %vm467_vm1 = vcmask (!%p338_p2), 551938   ;;  %vm537_vm2 = vcmask (!%p338_p2), 556038  }
   0x7   : > { %v2392_v3 = vshrl.u32 (!%p338_p2), %v407_v0, 7  ;;  %s2311_s25 = smov (!%p338_p2), 93   ;;  %s2312_s26 = smov (!%p338_p2), 111   ;;  %1163 = vmatprep.mubr.bf16.mxu0 (!%p338_p2), %v2318_v55  ;;  %2272 = vset.pattern.permute.xlu0 (!%p338_p2), %v2318_v55  ;;  %vm459_vm3 = vcmask (!%p338_p2), 900096   ;;  %vm425_vm4 = vcmask (!%p338_p2), 908288   ;;  %vm433_vm5 = vcmask (!%p338_p2), 549888  }
   0x8   : > { %v406_v4 = vunpack.c.0.s8 (!%p338_p2), %v405_v2  ;;  %s2313_s27 = smov (!%p338_p2), 92   ;;  %s2314_s28 = smov (!%p338_p2), 91   ;;  %vm494_vm6 = vcmask (!%p338_p2), 891904   ;;  %vm502_vm7 = vcmask (!%p338_p2), 553988   ;;  %vm529_vm8 = vcmask (!%p338_p2), 760832  }
   0x9   : > { %s2315_s29 = smov (!%p338_p2), 75   ;;  %s2316_s30 = smov (!%p338_p2), 74   ;;  %vm563_vm9 = vcmask (!%p338_p2), 752640   ;;  %vm596_vm10 = vcmask (!%p338_p2), 744448   ;;  %vm630_vm11 = vcmask (!%p338_p2), 613376   ;;  %vm664_vm12 = vcmask (!%p338_p2), 605184  }
   0xa   : > { %v2401_v5 = vsub.s32 (!%p338_p2), %v406_v4, %v2392_v3  ;;  %s2317_s12 = smov (!%p338_p2), 73   ;;  %vm697_vm13 = vcmask (!%p338_p2), 596992   ;;  %vm725_vm14 = vcmask (!%p338_p2), 1041408   ;;  %vm2320_vm15 = vmmov (!%p338_p2), 0   ;;  %s2321_s21 = smov (!%p338_p2), 36  }
   0xd   : > { %s2873_s18 = smov (!%p377_p3, %s1995_s18), 1 }
   0xe   : > { %s2057_s19 = sshll.u32 %s2873_s18, 3 }
   0xf   : > { %s2398_s22 = scalar_lea.vmem %s2860_s0, %s2057_s19 }
  0x10   : > { %v469_v6 = vld [vmem:[%s2398_s22] sm:$0x3f] }
  0x11   : > { %v435_v7 = vld [vmem:[%s2398_s22] sm:$0x3f]  ;;  %v478_v9 = vrot.slane %v469_v6, %v2401_v5  ;;  %v471_v15 = vcombine.high %v469_v6, %v469_v6 }
  0x12   : > { %v504_v8 = vld [vmem:[%s2398_s22] sm:$0x3f]  ;;  %v451_v10 = vrot.slane %v435_v7, %v2401_v5  ;;  %v437_v11 = vcombine.low %v435_v7, %v435_v7 }
  0x13   : > { %v401_v12 = vld [vmem:[%s2398_s22] sm:$0x3f]  ;;  %v520_v13 = vrot.slane %v504_v8, %v2401_v5  ;;  %490 = vrot.lane.b32.xlu0 %v478_v9, %s2309_s23  ;;  %v506_v20 = vcombine.low %v504_v8, %v504_v8  ;;  %v485_v23 = vrot.slane %v471_v15, %v2401_v5  ;;  %v486_v28 = vcombine.low %v478_v9, %v478_v9 }
  0x14   : > { %v410_v14 = vrot.slane %v401_v12, %v2401_v5  ;;  %457 = vrot.lane.b32.xlu1 %v451_v10, %s2310_s24  ;;  %v444_v16 = vrot.slane %v437_v11, %v2401_v5  ;;  %v403_v17 = vcombine.high %v401_v12, %v401_v12  ;;  %v539_v26 = vld [vmem:[%s2398_s22] sm:$0x3f] }
  0x15   : > { %v522_v18 = vcombine.low %v520_v13, %v520_v13  ;;  %v487_v24 = vcombine.low %v485_v23, %v485_v23  ;;  %v513_v25 = vrot.slane %v506_v20, %v2401_v5  ;;  %v572_v27 = vld [vmem:[%s2398_s22] sm:$0x3f]  ;;  %v541_v29 = vcombine.high %v539_v26, %v539_v26 }
  0x16   : > { %v418_v19 = vcombine.high %v410_v14, %v410_v14  ;;  %v452_v21 = vcombine.high %v444_v16, %v444_v16  ;;  %v417_v22 = vrot.slane %v403_v17, %v2401_v5  ;;  %v548_v31 = vrot.slane %v539_v26, %v2401_v5  ;;  %v605_v33 = vld [vmem:[%s2398_s22] sm:$0x3f] }
  0x17   : > { %v521_v30 = vcombine.low %v513_v25, %v513_v25  ;;  %v574_v32 = vcombine.low %v572_v27, %v572_v27  ;;  %v607_v34 = vcombine.high %v605_v33, %v605_v33  ;;  %v555_v35 = vrot.slane %v541_v29, %v2401_v5  ;;  %v639_v41 = vld [vmem:[%s2398_s22] sm:$0x3f] }
  0x18   : > { %527 = vrot.lane.b32.xlu1 %v522_v18, %s2311_s25  ;;  %421 = vrot.lane.b32.xlu0 %v418_v19, %s2312_s26  ;;  %v556_v36 = vcombine.high %v548_v31, %v548_v31  ;;  %v588_v38 = vrot.slane %v572_v27, %v2401_v5  ;;  %v614_v42 = vrot.slane %v605_v33, %v2401_v5  ;;  %v673_v48 = vld [vmem:[%s2398_s22] sm:$0x3f] }
  0x19   : > { %v581_v37 = vrot.slane %v574_v32, %v2401_v5  ;;  %v621_v40 = vrot.slane %v607_v34, %v2401_v5  ;;  %v655_v44 = vrot.slane %v639_v41, %v2401_v5  ;;  %v641_v45 = vcombine.low %v639_v41, %v639_v41 }
  0x1a   : > { %v622_v50 = vcombine.low %v614_v42, %v614_v42  ;;  %v682_v51 = vrot.slane %v673_v48, %v2401_v5  ;;  %v675_v53 = vcombine.high %v673_v48, %v673_v48 }
  0x1b   : > { %v589_v39 = vcombine.high %v581_v37, %v581_v37  ;;  %v623_v43 = vcombine.low %v621_v40, %v621_v40  ;;  %v657_v46 = vcombine.low %v655_v44, %v655_v44  ;;  %v648_v47 = vrot.slane %v641_v45, %v2401_v5 }
  0x1c   : > { %455 = vrot.lane.b32.xlu1 %v452_v21, %s2310_s24  ;;  %423 = vrot.lane.b32.xlu0 %v417_v22, %s2312_s26  ;;  %v690_v52 = vcombine.high %v682_v51, %v682_v51  ;;  %v689_v54 = vrot.slane %v675_v53, %v2401_v5 }
  0x1d   : > { %v656_v49 = vcombine.low %v648_v47, %v648_v47 }
  0x20   : > { %492 = vrot.lane.b32.xlu1 %v487_v24, %s2309_s23  ;;  %525 = vrot.lane.b32.xlu0 %v513_v25, %s2311_s25 }
  0x24   : > { %453 = vrot.lane.b32.xlu1 %v444_v16, %s2310_s24  ;;  %419 = vrot.lane.b32.xlu0 %v410_v14, %s2312_s26 }
  0x28   : > { %523 = vrot.lane.b32.xlu1 %v521_v30, %s2311_s25  ;;  %488 = vrot.lane.b32.xlu0 %v486_v28, %s2309_s23 }
  0x2c   : > { %561 = vrot.lane.b32.xlu1 %v555_v35, %s2313_s27  ;;  %559 = vrot.lane.b32.xlu0 %v556_v36, %s2313_s27 }
  0x30   : > { %594 = vrot.lane.b32.xlu1 %v588_v38, %s2314_s28  ;;  %592 = vrot.lane.b32.xlu0 %v589_v39, %s2314_s28 }
  0x34   : > { %628 = vrot.lane.b32.xlu1 %v623_v43, %s2315_s29  ;;  %626 = vrot.lane.b32.xlu0 %v614_v42, %s2315_s29 }
  0x38   : > { %662 = vrot.lane.b32.xlu1 %v657_v46, %s2316_s30  ;;  %660 = vrot.lane.b32.xlu0 %v648_v47, %s2316_s30  ;;  %v706_v46 = vld [vmem:[%s2863_s3] sm:$0xf]  ;;  %v2319_v47 = vmov 0.0  }
  0x3c   : > { %590 = vrot.lane.b32.xlu1 %v581_v37, %s2314_s28  ;;  %557 = vrot.lane.b32.xlu0 %v548_v31, %s2313_s27 }
  0x40   : > { %658 = vrot.lane.b32.xlu1 %v656_v49, %s2316_s30  ;;  %624 = vrot.lane.b32.xlu0 %v622_v50, %s2315_s29 }
  0x44   : > { %693 = vrot.lane.b32.xlu1 %v690_v52, %s2317_s12  ;;  %691 = vrot.lane.b32.xlu0 %v682_v51, %s2317_s12  ;;  %v822_v52 = vsub.s32 0, %v2392_v3 }
  0x48   : > { %695 = vrot.lane.b32.xlu0 %v689_v54, %s2317_s12  ;;  %719 = vperm.xlu1 %2271, %v716_v56   ;;  %v400_v54 = vld [vmem:[%s2861_s1] sm:$0x7]  ;;  %v826_v56 = vsub.s32 1, %v2392_v3 }
  0x85   : > { %v491_v57 = vpop.permute.xlu0 %490 }
  0x86   : > { %v458_v58 = vpop.permute.xlu1 %457 }
  0x87   : > { %468 = vst.msk [vmem:[#allocation4 + $0x10] sm:$0xc] %vm467_vm1, %v458_v58 }
  0x8a   : > { %v528_v59 = vpop.permute.xlu1 %527  ;;  %v422_v60 = vpop.permute.xlu0 %421 }
  0x8b   : > { %538 = vst.msk [vmem:[#allocation4 + $0x10] sm:$0xc0] %vm537_vm2, %v528_v59 }
  0x8e   : > { %v456_v61 = vpop.permute.xlu1 %455  ;;  %v424_v62 = vpop.permute.xlu0 %423 }
  0x8f   : > { %v461_v63 = vsel %vm459_vm3, %v456_v61, %v458_v58  ;;  %v427_v0 = vsel %vm425_vm4, %v422_v60, %v424_v62  ;;  %434 = vst.msk [vmem:[#allocation4 + $0x10] sm:$0x3] %vm433_vm5, %v424_v62  ;;  %v2515_v62 = vrot.slane %v400_v54, %v826_v56 }
  0x90   : > { %466 = vst [vmem:[#allocation4 + $0x8] sm:$0xc] %v461_v63  ;;  %432 = vst [vmem:[#allocation4 + $0x8] sm:$0x3] %v427_v0 }
  0x92   : > { %v493_v1 = vpop.permute.xlu1 %492  ;;  %v526_v2 = vpop.permute.xlu0 %525 }
  0x93   : > { %v496_v4 = vsel %vm494_vm6, %v491_v57, %v493_v1  ;;  %503 = vst.msk [vmem:[#allocation4 + $0x10] sm:$0x30] %vm502_vm7, %v493_v1  ;;  %v531_v5 = vsel %vm529_vm8, %v526_v2, %v528_v59  ;;  %v2513_v59 = vrot.slane %v400_v54, %v822_v52 }
  0x94   : > { %501 = vst [vmem:[#allocation4 + $0x8] sm:$0x30] %v496_v4  ;;  %536 = vst [vmem:[#allocation4 + $0x8] sm:$0xc0] %v531_v5 }
  0x96   : > { %v454_v6 = vpop.permute.xlu1 %453  ;;  %v420_v7 = vpop.permute.xlu0 %419 }
  0x97   : > { %v460_v8 = vsel %vm459_vm3, %v454_v6, %v456_v61  ;;  %v426_v9 = vsel %vm425_vm4, %v420_v7, %v422_v60  ;;  %v830_v7 = vsub.s32 2, %v2392_v3 }
  0x98   : > { %465 = vst [vmem:[#allocation4] sm:$0xc] %v460_v8  ;;  %431 = vst [vmem:[#allocation4] sm:$0x3] %v426_v9 }
  0x9a   : > { %v524_v10 = vpop.permute.xlu1 %523  ;;  %v489_v11 = vpop.permute.xlu0 %488  ;;  %v709_v48 = vld [vmem:[#allocation4 + $0x10] sm:$0xff] }
  0x9b   : > { %v530_v12 = vsel %vm529_vm8, %v524_v10, %v526_v2  ;;  %v495_v13 = vsel %vm494_vm6, %v489_v11, %v491_v57  ;;  %v708_v14 = vld [vmem:[#allocation4 + $0x8] sm:$0xff]  ;;  %v2522_v10 = vrot.slane %v400_v54, %v830_v7 }
  0x9c   : > { %535 = vst [vmem:[#allocation4] sm:$0xc0] %v530_v12  ;;  %500 = vst [vmem:[#allocation4] sm:$0x30] %v495_v13  ;;  %735 = vmatprep.subr.bf16.mxu1 %v708_v14 }
  0x9e   : > { %v562_v15 = vpop.permute.xlu1 %561  ;;  %v560_v16 = vpop.permute.xlu0 %559 }
  0x9f   : > { %571 = vst.msk [vmem:[#allocation4 + $0x28] sm:$0x3] %vm433_vm5, %v562_v15  ;;  %v565_v17 = vsel %vm563_vm9, %v560_v16, %v562_v15 }
  0xa0   : > { %570 = vst [vmem:[#allocation4 + $0x20] sm:$0x3] %v565_v17 }
  0xa2   : > { %v595_v18 = vpop.permute.xlu1 %594  ;;  %v593_v19 = vpop.permute.xlu0 %592 }
  0xa3   : > { %604 = vst.msk [vmem:[#allocation4 + $0x28] sm:$0xc] %vm467_vm1, %v595_v18  ;;  %v598_v20 = vsel %vm596_vm10, %v593_v19, %v595_v18  ;;  %v707_v21 = vld [vmem:[#allocation4] sm:$0xff]  ;;  %vm388_vm1 = vcmask 289792  }
  0xa4   : > { %603 = vst [vmem:[#allocation4 + $0x20] sm:$0xc] %v598_v20  ;;  %736 = vmatpush1.bf16.msra.mxu1 %v707_v21  ;;  %389 = vst.msk [vmem:[#allocation2] sm:$0xf] %vm388_vm1, %v2318_v55 }
  0xa6   : > { %v629_v22 = vpop.permute.xlu1 %628  ;;  %v627_v23 = vpop.permute.xlu0 %626 }
  0xa7   : > { %638 = vst.msk [vmem:[#allocation4 + $0x28] sm:$0x30] %vm502_vm7, %v629_v22  ;;  %v632_v24 = vsel %vm630_vm11, %v627_v23, %v629_v22 }
  0xa8   : > { %637 = vst [vmem:[#allocation4 + $0x20] sm:$0x30] %v632_v24 }
  0xaa   : > { %v663_v25 = vpop.permute.xlu1 %662  ;;  %v661_v26 = vpop.permute.xlu0 %660 }
  0xab   : > { %672 = vst.msk [vmem:[#allocation4 + $0x28] sm:$0xc0] %vm537_vm2, %v663_v25  ;;  %v666_v27 = vsel %vm664_vm12, %v661_v26, %v663_v25  ;;  %vm390_vm2 = vcmask 1044288  }
  0xac   : > { %671 = vst [vmem:[#allocation4 + $0x20] sm:$0xc0] %v666_v27 }
  0xae   : > { %v591_v28 = vpop.permute.xlu1 %590  ;;  %v558_v29 = vpop.permute.xlu0 %557 }
  0xaf   : > { %v597_v30 = vsel %vm596_vm10, %v591_v28, %v593_v19  ;;  %v564_v31 = vsel %vm563_vm9, %v558_v29, %v560_v16 }
  0xb0   : > { %602 = vst [vmem:[#allocation4 + $0x18] sm:$0xc] %v597_v30  ;;  %569 = vst [vmem:[#allocation4 + $0x18] sm:$0x3] %v564_v31 }
  0xb2   : > { %v659_v32 = vpop.permute.xlu1 %658  ;;  %v625_v33 = vpop.permute.xlu0 %624  ;;  %v712_v49 = vld [vmem:[#allocation4 + $0x28] sm:$0xff] }
  0xb3   : > { %v665_v34 = vsel %vm664_vm12, %v659_v32, %v661_v26  ;;  %v631_v35 = vsel %vm630_vm11, %v625_v33, %v627_v23  ;;  %v711_v36 = vld [vmem:[#allocation4 + $0x20] sm:$0xff]  ;;  %v1100_v32 = vld [vmem:[%s2866_s6] sm:$0xff] }
  0xb4   : > { %670 = vst [vmem:[#allocation4 + $0x18] sm:$0xc0] %v665_v34  ;;  %636 = vst [vmem:[#allocation4 + $0x18] sm:$0x30] %v631_v35  ;;  %737 = vmatprep.subr.bf16.mxu1 %v711_v36  ;;  %v1101_v34 = vld [vmem:[%s2866_s6 + $0x8] sm:$0xff] }
  0xb6   : > { %v694_v37 = vpop.permute.xlu1 %693  ;;  %v692_v38 = vpop.permute.xlu0 %691 }
  0xb7   : > { %v698_v39 = vsel %vm697_vm13, %v692_v38, %v694_v37 }
  0xb8   : > { %703 = vst [vmem:[#allocation4 + $0x30] sm:$0x3] %v698_v39 }
  0xba   : > { %v696_v40 = vpop.permute.xlu0 %695 }
  0xbb   : > { %v699_v41 = vsel %vm697_vm13, %v694_v37, %v696_v40  ;;  %705 = vst.msk [vmem:[#allocation4 + $0x40] sm:$0x3] %vm433_vm5, %v696_v40  ;;  %v710_v42 = vld [vmem:[#allocation4 + $0x18] sm:$0xff]  ;;  %vm391_vm5 = vcmask 97284  }
  0xbc   : > { %704 = vst [vmem:[#allocation4 + $0x38] sm:$0x3] %v699_v41  ;;  %738 = vmatpush1.bf16.msra.mxu1 %v710_v42  ;;  %vm392_vm7 = vmor %vm391_vm5, %vm390_vm2  ;;  %vm863_vm2 = vcmask 846848   ;;  %vm888_vm5 = vcmask 551936  }
  0xbd   : > { %393 = vst.msk [vmem:[#allocation2 + $0x8] sm:$0xff] %vm392_vm7, %v2318_v55  ;;  %vm913_vm7 = vcmask 556036  }
  0xbf   : > { %v713_v43 = vld [vmem:[#allocation4 + $0x30] sm:$0x3] }
  0xc0   : > { %v727_v45 = vsel %vm725_vm14, %v713_v43, 0 }
  0xc2   : > { %v715_v50 = vld [vmem:[#allocation4 + $0x40] sm:$0x3] }
  0xc3   : > { %v714_v44 = vld [vmem:[#allocation4 + $0x38] sm:$0x3]  ;;  %v733_v51 = vsel %vm725_vm14, %v715_v50, 0 }
  0xc4   : > { %2004 = vmatprep.subr.msk.bf16.mxu1 %vm725_vm14, %v714_v44  ;;  %vm859_vm14 = vcmask 1043744  }
  0xc5   : > { %740 = vmatpush1.bf16.msra.mxu1 %v727_v45 }
  0xc6   : > { %2134 = vmatprep.subr.bf16.mxu1 %v2319_v47 }
  0xc7   : > { %v720_v53 = vpop.permute.xlu1 %719 }
  0xc8   : > { %2005 = vmatmul.mubr.msk.bf16.vlgmr.msra.gmra.mrb[0].mxu1 %vm394_vm0, %v706_v46 }
  0xc9   : > { %2135 = vmatpush3.bf16.msra.mxu1 %v709_v48  ;;  %2140 = vmatprep.mubr.msk.bf16.mxu1 %vm2320_vm15, %v2319_v47 }
  0xca   : > { %2136 = vmatprep.subr.bf16.mxu1 %v2319_v47 }
  0xcd   : > { %2137 = vmatpush3.bf16.msra.mxu1 %v712_v49 }
  0xce   : > { %2138 = vmatprep.subr.bf16.mxu1 %v2319_v47 }
  0xd1   : > { %2139 = vmatpush3.bf16.msra.mxu1 %v733_v51 }
  0xd2   : > { %2144 = vmatprep.subr.bf16.mxu1 %v2319_v47 }
  0xd4   : > { %2141 = vmatmul.mubr.msk.bf16.vlgmr.msra.gmra.mrb[4].mxu1 %vm394_vm0, %v706_v46 }
  0xd5   : > { %2154 = vmatprep.mubr.msk.bf16.mxu1 %vm2320_vm15, %v2319_v47  ;;  %vm860_vm15 = vcmask 1047556  }
  0xd6   : > { %vm861_vm1 = vmor %vm860_vm15, %vm859_vm14  ;;  %vm1121_vm14 = vcmask 1043456   ;;  %vm1117_vm15 = vcmask 588800  }
 0x19b   : > { %v769_v57 = vpop.f32.mrb[0].mxu1 }
 0x19c   : > { %v770_v58 = vadd.f32 %v769_v57, %v720_v53  ;;  %v771_v60 = vpop.f32.mrb[1].mxu1 }
 0x19d   : > { %v772_v61 = vadd.f32 %v771_v60, %v720_v53  ;;  %v773_v63 = vpop.f32.mrb[2].mxu1 }
 0x19e   : > { %v816_v0 = vmax.f32 %v770_v58, 0.0  ;;  %v774_v1 = vpop.f32.mrb[3].mxu1 }
 0x19f   : > { %v817_v2 = vmax.f32 %v772_v61, 0.0 }
 0x1a0   : > { %v835_v4 = vmul.f32 %v2513_v59, %v816_v0 }
 0x1a1   : > { %v836_v5 = vmul.f32 %v2515_v62, %v817_v2 }
 0x1a3   : > { %v2059_v6 = vpack.c.bf16 %v836_v5, %v835_v4 }
 0x1a5   : > { %849 = vrot.lane.b32.xlu0 %v2059_v6, %s2321_s21 }
 0x1a7   : > { %v810_v8 = vpop.f32.mrb[4].mxu1 }
 0x1a8   : > { %v811_v9 = vadd.f32 %v810_v8, %v720_v53  ;;  %v2142_v11 = vpop.f32.mrb[5].mxu1 }
 0x1a9   : > { %v813_v12 = vpop.f32.mrb[6].mxu1 }
 0x1aa   : > { %v818_v13 = vmax.f32 %v811_v9, 0.0  ;;  %v2143_v14 = vpop.f32.mrb[7].mxu1 }
 0x1ac   : > { %v837_v15 = vmul.f32 %v2522_v10, %v818_v13 }
 0x1ae   : > { %v2060_v16 = vpack.c.bf16 %v837_v15, %v837_v15 }
 0x1b0   : > { %851 = vrot.lane.b32.xlu1 %v2060_v16, %s2321_s21 }
 0x217   : > { %v850_v17 = vpop.permute.xlu0 %849 }
 0x218   : > { %v853_v3 = vrot.slane %v850_v17, 4 }
 0x21a   : > { %v855_v18 = vsel %vm394_vm0, %v853_v3, %v850_v17 }
 0x21b   : > { %862 = vst.msk [vmem:[#allocation2] sm:$0xff] %vm861_vm1, %v855_v18  ;;  %vm396_vm1 = vcmask 1048384  }
 0x21c   : > { %397 = vst.msk [vmem:[#allocation3 + $0x10] sm:$0xff] %vm396_vm1, %v2318_v55 }
 0x222   : > { %v852_v19 = vpop.permute.xlu1 %851  ;;  %v890_v20 = vld [vmem:[#allocation2] sm:$0xff] }
 0x223   : > { %v856_v21 = vsel %vm394_vm0, %v853_v3, %v852_v19  ;;  %v2012_v22 = vcombine.low %v890_v20, %v890_v20  ;;  %v2010_v23 = vcombine.high %v890_v20, %v890_v20 }
 0x224   : > { %864 = vst.msk [vmem:[#allocation2 + $0x8] sm:$0xf] %vm863_vm2, %v856_v21  ;;  %vm1244_vm2 = vcmask 1047840  }
 0x225   : > { %900 = vrot.lane.b32.xlu1 %v2012_v22, %s2310_s24  ;;  %877 = vrot.lane.b32.xlu0 %v2010_v23, %s2312_s26 }
 0x229   : > { %949 = vrot.lane.b32.xlu1 %v2012_v22, %s2311_s25  ;;  %902 = vrot.lane.b32.xlu0 %v2010_v23, %s2310_s24 }
 0x22b   : > { %v2284_v24 = vld [vmem:[#allocation2 + $0x8] ss:$0 sps:$4 sm:$0xff]  }
 0x22c   : > { %v2285_v25 = vld [vmem:[#allocation2 + $0x8] ss:$0 sps:$4 sm:$0xff]  }
 0x22d   : > { %997 = vrot.lane.b32.xlu1 %v2012_v22, %s2314_s28  ;;  %875 = vrot.lane.b32.xlu0 %v2012_v22, %s2312_s26  ;;  %v2286_v26 = vld [vmem:[#allocation2 + $0x8] ss:$0 sps:$4 sm:$0xff]  }
 0x22e   : > { %v2287_v27 = vld [vmem:[#allocation2 + $0x8] ss:$0 sps:$4 sm:$0xff]  }
 0x22f   : > { %v2288_v28 = vld [vmem:[#allocation2 + $0x8] ss:$0 sps:$4 sm:$0xff]  }
 0x230   : > { %v2289_v29 = vld [vmem:[#allocation2 + $0x8] ss:$0 sps:$4 sm:$0xff]  }
 0x231   : > { %1045 = vrot.lane.b32.xlu1 %v2012_v22, %s2316_s30  ;;  %927 = vrot.lane.b32.xlu0 %v2010_v23, %s2309_s23  ;;  %v2290_v30 = vld [vmem:[#allocation2 + $0x8] ss:$0 sps:$4 sm:$0xff]  }
 0x232   : > { %v2291_v31 = vld [vmem:[#allocation2 + $0x8] ss:$0 sps:$4 sm:$0xff]  }
 0x233   : > { %v2292_v33 = vld [vmem:[#allocation2 + $0x8] ss:$0 sps:$4 sm:$0xff]  }
 0x235   : > { %879 = vrot.lane.b32.xlu1 %v2284_v24, %s2312_s26  ;;  %951 = vrot.lane.b32.xlu0 %v2010_v23, %s2311_s25 }
 0x239   : > { %904 = vrot.lane.b32.xlu1 %v2285_v25, %s2310_s24  ;;  %925 = vrot.lane.b32.xlu0 %v2012_v22, %s2309_s23 }
 0x23d   : > { %929 = vrot.lane.b32.xlu1 %v2286_v26, %s2309_s23  ;;  %975 = vrot.lane.b32.xlu0 %v2010_v23, %s2313_s27 }
 0x241   : > { %953 = vrot.lane.b32.xlu1 %v2287_v27, %s2311_s25  ;;  %999 = vrot.lane.b32.xlu0 %v2010_v23, %s2314_s28 }
 0x245   : > { %977 = vrot.lane.b32.xlu1 %v2288_v28, %s2313_s27  ;;  %973 = vrot.lane.b32.xlu0 %v2012_v22, %s2313_s27 }
 0x249   : > { %1001 = vrot.lane.b32.xlu1 %v2289_v29, %s2314_s28  ;;  %1023 = vrot.lane.b32.xlu0 %v2010_v23, %s2315_s29 }
 0x24d   : > { %1025 = vrot.lane.b32.xlu1 %v2290_v30, %s2315_s29  ;;  %1047 = vrot.lane.b32.xlu0 %v2010_v23, %s2316_s30 }
 0x251   : > { %1049 = vrot.lane.b32.xlu1 %v2291_v31, %s2316_s30  ;;  %1021 = vrot.lane.b32.xlu0 %v2012_v22, %s2315_s29 }
 0x255   : > { %1071 = vrot.lane.b32.xlu1 %v2010_v23, %s2317_s12  ;;  %1069 = vrot.lane.b32.xlu0 %v2012_v22, %s2317_s12 }
 0x259   : > { %1104 = vperm.xlu1 %2271, %v1100_v32   ;;  %1073 = vrot.lane.b32.xlu0 %v2292_v33, %s2317_s12 }
 0x25d   : > { %1109 = vperm.xlu0 %2272, %v1101_v34  }
 0x297   : > { %v901_v35 = vpop.permute.xlu1 %900  ;;  %v878_v36 = vpop.permute.xlu0 %877 }
 0x29b   : > { %v950_v37 = vpop.permute.xlu1 %949  ;;  %v903_v38 = vpop.permute.xlu0 %902 }
 0x29c   : > { %v906_v39 = vsel %vm459_vm3, %v901_v35, %v903_v38 }
 0x29d   : > { %911 = vst [vmem:[#allocation4] sm:$0xf0] %v906_v39 }
 0x29f   : > { %v998_v40 = vpop.permute.xlu1 %997  ;;  %v876_v41 = vpop.permute.xlu0 %875 }
 0x2a0   : > { %v881_v42 = vsel %vm425_vm4, %v876_v41, %v878_v36 }
 0x2a1   : > { %886 = vst [vmem:[#allocation4] sm:$0xf] %v881_v42 }
 0x2a3   : > { %v1046_v43 = vpop.permute.xlu1 %1045  ;;  %v928_v44 = vpop.permute.xlu0 %927 }
 0x2a7   : > { %v880_v45 = vpop.permute.xlu1 %879  ;;  %v952_v46 = vpop.permute.xlu0 %951 }
 0x2a8   : > { %v882_v48 = vsel %vm425_vm4, %v878_v36, %v880_v45  ;;  %889 = vst.msk [vmem:[#allocation4 + $0x10] sm:$0xf] %vm888_vm5, %v880_v45  ;;  %v955_v49 = vsel %vm529_vm8, %v950_v37, %v952_v46  ;;  %v1085_v2 = vld [vmem:[#allocation4] sm:$0xff]  ;;  %v2293_v37 = vld [vmem:[%s2865_s5] sm:$0xff]  }
 0x2a9   : > { %887 = vst [vmem:[#allocation4 + $0x8] sm:$0xf] %v882_v48  ;;  %960 = vst [vmem:[#allocation4 + $0x18] sm:$0xf0] %v955_v49 }
 0x2ab   : > { %v905_v50 = vpop.permute.xlu1 %904  ;;  %v926_v51 = vpop.permute.xlu0 %925 }
 0x2ac   : > { %v907_v52 = vsel %vm459_vm3, %v903_v38, %v905_v50  ;;  %914 = vst.msk [vmem:[#allocation4 + $0x10] sm:$0xf0] %vm913_vm7, %v905_v50  ;;  %v931_v53 = vsel %vm494_vm6, %v926_v51, %v928_v44 }
 0x2ad   : > { %912 = vst [vmem:[#allocation4 + $0x8] sm:$0xf0] %v907_v52  ;;  %936 = vst [vmem:[#allocation4 + $0x18] sm:$0xf] %v931_v53 }
 0x2af   : > { %v930_v54 = vpop.permute.xlu1 %929  ;;  %v976_v56 = vpop.permute.xlu0 %975 }
 0x2b0   : > { %v932_v57 = vsel %vm494_vm6, %v928_v44, %v930_v54  ;;  %938 = vst.msk [vmem:[#allocation4 + $0x28] sm:$0xf] %vm888_vm5, %v930_v54 }
 0x2b1   : > { %937 = vst [vmem:[#allocation4 + $0x20] sm:$0xf] %v932_v57 }
 0x2b3   : > { %v954_v58 = vpop.permute.xlu1 %953  ;;  %v1000_v60 = vpop.permute.xlu0 %999  ;;  %v1087_v61 = vld [vmem:[#allocation4 + $0x10] sm:$0xff] }
 0x2b4   : > { %v956_v63 = vsel %vm529_vm8, %v952_v46, %v954_v58  ;;  %962 = vst.msk [vmem:[#allocation4 + $0x28] sm:$0xf0] %vm913_vm7, %v954_v58  ;;  %v1003_v0 = vsel %vm596_vm10, %v998_v40, %v1000_v60  ;;  %2145 = vmatpush3.bf16.msra.mxu1 %v1087_v61  ;;  %v1086_v1 = vld [vmem:[#allocation4 + $0x8] sm:$0xff]  ;;  %v1088_v14 = vld [vmem:[#allocation4 + $0x18] sm:$0xff] }
 0x2b5   : > { %961 = vst [vmem:[#allocation4 + $0x20] sm:$0xf0] %v956_v63  ;;  %1008 = vst [vmem:[#allocation4 + $0x30] sm:$0xf0] %v1003_v0  ;;  %1131 = vmatprep.subr.bf16.mxu0 %v1086_v1  ;;  %2146 = vmatprep.subr.bf16.mxu1 %v2319_v47 }
 0x2b6   : > { %1132 = vmatpush1.bf16.msra.mxu0 %v1085_v2 }
 0x2b7   : > { %v978_v4 = vpop.permute.xlu1 %977  ;;  %v974_v5 = vpop.permute.xlu0 %973 }
 0x2b8   : > { %v980_v6 = vsel %vm563_vm9, %v976_v56, %v978_v4  ;;  %986 = vst.msk [vmem:[#allocation4 + $0x40] sm:$0xf] %vm888_vm5, %v978_v4  ;;  %v979_v7 = vsel %vm563_vm9, %v974_v5, %v976_v56 }
 0x2b9   : > { %985 = vst [vmem:[#allocation4 + $0x38] sm:$0xf] %v980_v6  ;;  %984 = vst [vmem:[#allocation4 + $0x30] sm:$0xf] %v979_v7 }
 0x2bb   : > { %v1002_v8 = vpop.permute.xlu1 %1001  ;;  %v1024_v9 = vpop.permute.xlu0 %1023  ;;  %v1090_v11 = vld [vmem:[#allocation4 + $0x28] sm:$0xff] }
 0x2bc   : > { %v1004_v12 = vsel %vm596_vm10, %v1000_v60, %v1002_v8  ;;  %1010 = vst.msk [vmem:[#allocation4 + $0x40] sm:$0xf0] %vm913_vm7, %v1002_v8  ;;  %2147 = vmatpush3.bf16.msra.mxu1 %v1090_v11  ;;  %v1089_v13 = vld [vmem:[#allocation4 + $0x20] sm:$0xff] }
 0x2bd   : > { %1009 = vst [vmem:[#allocation4 + $0x38] sm:$0xf0] %v1004_v12  ;;  %1133 = vmatprep.subr.bf16.mxu0 %v1089_v13  ;;  %2148 = vmatprep.subr.bf16.mxu1 %v2319_v47 }
 0x2be   : > { %1134 = vmatpush1.bf16.msra.mxu0 %v1088_v14 }
 0x2bf   : > { %v1026_v15 = vpop.permute.xlu1 %1025  ;;  %v1048_v16 = vpop.permute.xlu0 %1047 }
 0x2c0   : > { %v1028_v17 = vsel %vm630_vm11, %v1024_v9, %v1026_v15  ;;  %1034 = vst.msk [vmem:[#allocation4 + $0x58] sm:$0xf] %vm888_vm5, %v1026_v15  ;;  %v1051_v3 = vsel %vm664_vm12, %v1046_v43, %v1048_v16  ;;  %v1091_v24 = vld [vmem:[#allocation4 + $0x30] sm:$0xff] }
 0x2c1   : > { %1033 = vst [vmem:[#allocation4 + $0x50] sm:$0xf] %v1028_v17  ;;  %1056 = vst [vmem:[#allocation4 + $0x48] sm:$0xf0] %v1051_v3  ;;  %v2294_v15 = vld [vmem:[%s2867_s7 + $0x4] ss:$8 sps:$4 sm:$0xff]  }
 0x2c2   : > { %v1463_v17 = vld [vmem:[%s2868_s8 + $0x10] sm:$0xff]  ;;  %v1462_v3 = vld [vmem:[%s2868_s8 + $0x8] sm:$0xff] }
 0x2c3   : > { %v1050_v18 = vpop.permute.xlu1 %1049  ;;  %v1022_v19 = vpop.permute.xlu0 %1021  ;;  %v1093_v20 = vld [vmem:[#allocation4 + $0x40] sm:$0xff] }
 0x2c4   : > { %v1052_v21 = vsel %vm664_vm12, %v1048_v16, %v1050_v18  ;;  %1058 = vst.msk [vmem:[#allocation4 + $0x58] sm:$0xf0] %vm913_vm7, %v1050_v18  ;;  %v1027_v22 = vsel %vm630_vm11, %v1022_v19, %v1024_v9  ;;  %2149 = vmatpush3.bf16.msra.mxu1 %v1093_v20  ;;  %v1092_v23 = vld [vmem:[#allocation4 + $0x38] sm:$0xff]  ;;  %v1461_v16 = vld [vmem:[%s2868_s8] sm:$0xff]  ;;  %v1464_v18 = vld [vmem:[%s2868_s8 + $0x18] sm:$0xff]  ;;  %vm1268_vm7 = vcmask 556032  }
 0x2c5   : > { %1057 = vst [vmem:[#allocation4 + $0x50] sm:$0xf0] %v1052_v21  ;;  %1032 = vst [vmem:[#allocation4 + $0x48] sm:$0xf] %v1027_v22  ;;  %1135 = vmatprep.subr.bf16.mxu0 %v1092_v23  ;;  %2150 = vmatprep.subr.bf16.mxu1 %v2319_v47 }
 0x2c6   : > { %1136 = vmatpush1.bf16.msra.mxu0 %v1091_v24 }
 0x2c7   : > { %v1072_v25 = vpop.permute.xlu1 %1071  ;;  %v1070_v26 = vpop.permute.xlu0 %1069 }
 0x2c8   : > { %v1075_v27 = vsel %vm697_vm13, %v1070_v26, %v1072_v25 }
 0x2c9   : > { %1080 = vst [vmem:[#allocation4 + $0x60] sm:$0xf] %v1075_v27 }
 0x2cb   : > { %v1074_v28 = vpop.permute.xlu0 %1073  ;;  %v1096_v29 = vld [vmem:[#allocation4 + $0x58] sm:$0xff] }
 0x2cc   : > { %v1076_v30 = vsel %vm697_vm13, %v1072_v25, %v1074_v28  ;;  %1082 = vst.msk [vmem:[#allocation4 + $0x70] sm:$0xf] %vm888_vm5, %v1074_v28  ;;  %2151 = vmatpush3.bf16.msra.mxu1 %v1096_v29  ;;  %v1095_v31 = vld [vmem:[#allocation4 + $0x50] sm:$0xff]  ;;  %v1094_v32 = vld [vmem:[#allocation4 + $0x48] sm:$0xff]  ;;  %vm1247_vm5 = vcmask 850944  }
 0x2cd   : > { %1081 = vst [vmem:[#allocation4 + $0x68] sm:$0xf] %v1076_v30  ;;  %1137 = vmatprep.subr.bf16.mxu0 %v1095_v31  ;;  %2152 = vmatprep.subr.bf16.mxu1 %v2319_v47 }
 0x2ce   : > { %1138 = vmatpush1.bf16.msra.mxu0 %v1094_v32 }
 0x2d0   : > { %v1097_v33 = vld [vmem:[#allocation4 + $0x60] sm:$0xf] }
 0x2d1   : > { %v1123_v38 = vsel %vm1121_vm14, %v1097_v33, 0 }
 0x2d3   : > { %v1099_v34 = vld [vmem:[#allocation4 + $0x70] sm:$0xf] }
 0x2d4   : > { %v1098_v35 = vld [vmem:[#allocation4 + $0x68] sm:$0xf]  ;;  %v1129_v36 = vsel %vm1121_vm14, %v1099_v34, 0 }
 0x2d5   : > { %2037 = vmatprep.subr.msk.bf16.mxu0 %vm1121_vm14, %v1098_v35  ;;  %2153 = vmatpush3.bf16.msra.mxu1 %v1129_v36 }
 0x2d6   : > { %1140 = vmatpush1.bf16.msra.mxu0 %v1123_v38  ;;  %1563 = vmatprep.subr.bf16.mxu1 %v2318_v55 }
 0x2d8   : > { %2155 = vmatmul.mubr.msk.bf16.vlgmr.msra.gmra.mrb[8].mxu1 %vm1117_vm15, %v2293_v37  ;;  %v1105_v47 = vpop.permute.xlu1 %1104 }
 0x2d9   : > { %2038 = vmatmul.mubr.msk.bf16.vlgmr.msra.gmra.mrb[0].mxu0 %vm1117_vm15, %v2293_v37 }
 0x2dc   : > { %v1110_v40 = vpop.permute.xlu0 %1109 }
 0x3ab   : > { %v1208_v39 = vpop.f32.mrb[8].mxu1 }
 0x3ac   : > { %v1209_v41 = vadd.f32 %v1208_v39, %v1105_v47  ;;  %v1165_v42 = vpop.f32.mrb[0].mxu0  ;;  %v2156_v43 = vpop.f32.mrb[9].mxu1 }
 0x3ad   : > { %v1166_v44 = vadd.f32 %v1165_v42, %v1105_v47  ;;  %v1167_v45 = vpop.f32.mrb[1].mxu0  ;;  %v1211_v46 = vpop.f32.mrb[10].mxu1 }
 0x3ae   : > { %v1217_v48 = vmax.f32 %v1209_v41, 0.0  ;;  %v1168_v49 = vadd.f32 %v1167_v45, %v1105_v47  ;;  %v1212_v50 = vadd.f32 %v1211_v46, %v1110_v40  ;;  %v1169_v51 = vpop.f32.mrb[2].mxu0  ;;  %v2157_v52 = vpop.f32.mrb[11].mxu1 }
 0x3af   : > { %v1215_v53 = vmax.f32 %v1166_v44, 0.0  ;;  %v1170_v54 = vadd.f32 %v1169_v51, %v1110_v40  ;;  %v1171_v56 = vpop.f32.mrb[3].mxu0 }
 0x3b0   : > { %v1216_v57 = vmax.f32 %v1168_v49, 0.0  ;;  %v1220_v58 = vmax.f32 %v1212_v50, 0.0  ;;  %v1172_v60 = vadd.f32 %v1171_v56, %v1110_v40  ;;  %v1223_v63 = vmul.f32 %v1217_v48, %v2522_v10 }
 0x3b1   : > { %v1218_v61 = vmax.f32 %v1170_v54, 0.0  ;;  %v1221_v2 = vmul.f32 %v1215_v53, %v2513_v59 }
 0x3b2   : > { %v1219_v0 = vmax.f32 %v1172_v60, 0.0  ;;  %v1226_v1 = vmul.f32 %v1220_v58, %v2522_v10  ;;  %v1222_v5 = vmul.f32 %v1216_v57, %v2515_v62 }
 0x3b3   : > { %v1224_v4 = vmul.f32 %v1218_v61, %v2513_v59 }
 0x3b4   : > { %v1225_v6 = vmul.f32 %v1219_v0, %v2515_v62  ;;  %v1229_v7 = vpack.c.bf16 %v1226_v1, %v1223_v63 }
 0x3b5   : > { %v1227_v8 = vpack.c.bf16 %v1224_v4, %v1221_v2 }
 0x3b6   : > { %1237 = vrot.lane.b32.xlu0 %v1229_v7, %s2321_s21  ;;  %v1228_v9 = vpack.c.bf16 %v1225_v6, %v1222_v5 }
 0x3b7   : > { %1233 = vrot.lane.b32.xlu1 %v1227_v8, %s2321_s21  ;;  %v1640_v8 = vld [vmem:[%s2862_s2 + $0x80] sm:$0xff] }
 0x3bb   : > { %1235 = vrot.lane.b32.xlu1 %v1228_v9, %s2321_s21  ;;  %v1641_v9 = vld [vmem:[%s2862_s2 + $0x88] sm:$0xff] }
 0x428   : > { %v1238_v10 = vpop.permute.xlu0 %1237 }
 0x429   : > { %v1234_v11 = vpop.permute.xlu1 %1233 }
 0x42a   : > { %1245 = vst.msk [vmem:[#allocation3] sm:$0xff] %vm1244_vm2, %v1234_v11 }
 0x42d   : > { %v1236_v12 = vpop.permute.xlu1 %1235 }
 0x42e   : > { %v1239_v59 = vsel %vm394_vm0, %v1234_v11, %v1236_v12  ;;  %v1240_v13 = vsel %vm394_vm0, %v1236_v12, %v1238_v10  ;;  %vm1503_vm0 = vcmask 130048   ;;  %v1624_v10 = vld [vmem:[%s2862_s2] sm:$0xff]  ;;  %v2193_v12 = vpack.c.bf16 %v1641_v9, %v1640_v8  ;;  %v1638_v8 = vld [vmem:[%s2862_s2 + $0x70] sm:$0xff] }
 0x42f   : > { %1248 = vst.msk [vmem:[#allocation3 + $0x10] sm:$0xff] %vm1247_vm5, %v1240_v13  ;;  %2046 = vmatprep.mubr.msk.bf16.mxu1 %vm1503_vm0, %v2294_v15  ;;  %2044 = vmatprep.mubr.msk.bf16.mxu0 %vm1503_vm0, %v2294_v15  ;;  %v1642_v13 = vld [vmem:[%s2862_s2 + $0x90] sm:$0xff] }
 0x431   : > { %v1270_v62 = vld [vmem:[#allocation3] sm:$0xff] }
 0x432   : > { %1276 = vrot.lane.b32.xlu0 %v1270_v62, %s2310_s24  ;;  %1255 = vrot.lane.b32.xlu1 %v1270_v62, %s2312_s26 }
 0x436   : > { %1316 = vrot.lane.b32.xlu0 %v1270_v62, %s2311_s25  ;;  %1296 = vrot.lane.b32.xlu1 %v1270_v62, %s2309_s23  ;;  %v1251_v14 = vld [vmem:[#allocation3 + $0x10] sm:$0xff] }
 0x43a   : > { %1356 = vrot.lane.b32.xlu0 %v1270_v62, %s2314_s28  ;;  %1336 = vrot.lane.b32.xlu1 %v1270_v62, %s2313_s27 }
 0x43e   : > { %1396 = vrot.lane.b32.xlu0 %v1270_v62, %s2316_s30  ;;  %1376 = vrot.lane.b32.xlu1 %v1270_v62, %s2315_s29 }
 0x442   : > { %1259 = vrot.lane.b32.xlu0 %v1251_v14, %s2312_s26  ;;  %1257 = vrot.lane.b32.xlu1 %v1239_v59, %s2312_s26 }
 0x446   : > { %1278 = vrot.lane.b32.xlu0 %v1239_v59, %s2310_s24  ;;  %1280 = vrot.lane.b32.xlu1 %v1251_v14, %s2310_s24  ;;  %s2058_s24 = sshll.u32 %s2873_s18, 4 }
 0x44a   : > { %1300 = vrot.lane.b32.xlu0 %v1251_v14, %s2309_s23  ;;  %1298 = vrot.lane.b32.xlu1 %v1239_v59, %s2309_s23 }
 0x44e   : > { %1318 = vrot.lane.b32.xlu0 %v1239_v59, %s2311_s25  ;;  %1320 = vrot.lane.b32.xlu1 %v1251_v14, %s2311_s25 }
 0x452   : > { %1340 = vrot.lane.b32.xlu0 %v1251_v14, %s2313_s27  ;;  %1338 = vrot.lane.b32.xlu1 %v1239_v59, %s2313_s27 }
 0x456   : > { %1358 = vrot.lane.b32.xlu0 %v1239_v59, %s2314_s28  ;;  %1360 = vrot.lane.b32.xlu1 %v1251_v14, %s2314_s28 }
 0x45a   : > { %1380 = vrot.lane.b32.xlu0 %v1251_v14, %s2315_s29  ;;  %1378 = vrot.lane.b32.xlu1 %v1239_v59, %s2315_s29 }
 0x45e   : > { %1398 = vrot.lane.b32.xlu0 %v1239_v59, %s2316_s30  ;;  %1400 = vrot.lane.b32.xlu1 %v1251_v14, %s2316_s30  ;;  %s386_s30 = scalar_lea.vmem %s2871_s11, %s2058_s24 }
 0x462   : > { %1420 = vrot.lane.b32.xlu0 %v1251_v14, %s2317_s12  ;;  %1418 = vrot.lane.b32.xlu1 %v1239_v59, %s2317_s12  ;;  %v1625_v59 = vld [vmem:[%s2862_s2 + $0x8] sm:$0xff] }
 0x466   : > { %1467 = vperm.xlu0 %2272, %v1461_v16   ;;  %1416 = vrot.lane.b32.xlu1 %v1270_v62, %s2317_s12  ;;  %v1643_v62 = vld [vmem:[%s2862_s2 + $0x98] sm:$0xff]  ;;  %v1656_v16 = vld [vmem:[%s2862_s2 + $0x100] sm:$0xff] }
 0x46a   : > { %1477 = vperm.xlu0 %2272, %v1463_v17   ;;  %1472 = vperm.xlu1 %2271, %v1462_v3   ;;  %v1657_v17 = vld [vmem:[%s2862_s2 + $0x108] sm:$0xff] }
 0x46e   : > { %1482 = vperm.xlu1 %2271, %v1464_v18   ;;  %v2296_v18 = vld [vmem:[%s2867_s7] ss:$8 sps:$4 sm:$0xff]  }
 0x4a4   : > { %v1277_v19 = vpop.permute.xlu0 %1276  ;;  %v1256_v20 = vpop.permute.xlu1 %1255 }
 0x4a8   : > { %v1317_v21 = vpop.permute.xlu0 %1316  ;;  %v1297_v22 = vpop.permute.xlu1 %1296 }
 0x4ac   : > { %v2655_v23 = vpop.permute.xlu0 %1356  ;;  %v1337_v24 = vpop.permute.xlu1 %1336 }
 0x4b0   : > { %v2657_v25 = vpop.permute.xlu0 %1396  ;;  %v2659_v26 = vpop.permute.xlu1 %1376 }
 0x4b4   : > { %v1260_v27 = vpop.permute.xlu0 %1259  ;;  %v1258_v28 = vpop.permute.xlu1 %1257 }
 0x4b5   : > { %1269 = vst.msk [vmem:[#allocation4 + $0x10] sm:$0xff] %vm1268_vm7, %v1260_v27  ;;  %v1261_v29 = vsel %vm425_vm4, %v1256_v20, %v1258_v28  ;;  %v1262_v30 = vsel %vm425_vm4, %v1258_v28, %v1260_v27  ;;  %v2195_v20 = vpack.c.bf16 %v1625_v59, %v1624_v10  ;;  %v1644_v27 = vld [vmem:[%s2862_s2 + $0xa0] sm:$0xff]  ;;  %v1645_v28 = vld [vmem:[%s2862_s2 + $0xa8] sm:$0xff]  ;;  %vm1938_vm4 = vcmask 1024  }
 0x4b6   : > { %1266 = vst [vmem:[#allocation4] sm:$0xff] %v1261_v29  ;;  %1267 = vst [vmem:[#allocation4 + $0x8] sm:$0xff] %v1262_v30  ;;  %1510 = vmatprep.subr.bf16.mxu0 %v1262_v30  ;;  %v1628_v30 = vld [vmem:[%s2862_s2 + $0x20] sm:$0xff] }
 0x4b7   : > { %1511 = vmatpush1.bf16.msra.mxu0 %v1261_v29  ;;  %v1664_v10 = vld [vmem:[%s2862_s2 + $0x140] sm:$0xf] }
 0x4b8   : > { %v1279_v31 = vpop.permute.xlu0 %1278  ;;  %v1281_v32 = vpop.permute.xlu1 %1280 }
 0x4b9   : > { %v1282_v33 = vsel %vm459_vm3, %v1277_v19, %v1279_v31  ;;  %v1283_v34 = vsel %vm459_vm3, %v1279_v31, %v1281_v32  ;;  %1289 = vst.msk [vmem:[#allocation4 + $0x28] sm:$0xff] %vm1268_vm7, %v1281_v32  ;;  %v2297_v19 = vld [vmem:[%s2867_s7 + $0x14] ss:$8 sps:$4 sm:$0xff]   ;;  %v2201_v32 = vpack.c.bf16 %v1645_v28, %v1644_v27  ;;  %vm1854_vm3 = vcmask 261120  }
 0x4ba   : > { %1287 = vst [vmem:[#allocation4 + $0x18] sm:$0xff] %v1282_v33  ;;  %1288 = vst [vmem:[#allocation4 + $0x20] sm:$0xff] %v1283_v34  ;;  %1512 = vmatprep.subr.bf16.mxu0 %v1283_v34  ;;  %v1660_v34 = vld [vmem:[%s2862_s2 + $0x120] sm:$0xff] }
 0x4bb   : > { %1513 = vmatpush1.bf16.msra.mxu0 %v1282_v33  ;;  %v1629_v33 = vld [vmem:[%s2862_s2 + $0x28] sm:$0xff] }
 0x4bc   : > { %v1301_v35 = vpop.permute.xlu0 %1300  ;;  %v1299_v36 = vpop.permute.xlu1 %1298  ;;  %v1436_v37 = vld [vmem:[#allocation4 + $0x10] sm:$0xff] }
 0x4bd   : > { %1309 = vst.msk [vmem:[#allocation4 + $0x40] sm:$0xff] %vm1268_vm7, %v1301_v35  ;;  %v1302_v38 = vsel %vm494_vm6, %v1297_v22, %v1299_v36  ;;  %v1303_v47 = vsel %vm494_vm6, %v1299_v36, %v1301_v35  ;;  %1564 = vmatpush1.bf16.msra.mxu1 %v1436_v37  ;;  %v2197_v22 = vpack.c.bf16 %v1643_v62, %v1642_v13  ;;  %v1661_v35 = vld [vmem:[%s2862_s2 + $0x128] sm:$0xff]  ;;  %v1646_v36 = vld [vmem:[%s2862_s2 + $0xb0] sm:$0xff]  ;;  %v1647_v37 = vld [vmem:[%s2862_s2 + $0xb8] sm:$0xff]  ;;  %vm1936_vm6 = vcmask 7168  }
 0x4be   : > { %1307 = vst [vmem:[#allocation4 + $0x30] sm:$0xff] %v1302_v38  ;;  %1308 = vst [vmem:[#allocation4 + $0x38] sm:$0xff] %v1303_v47  ;;  %1565 = vmatprep.subr.bf16.mxu1 %v2318_v55  ;;  %1514 = vmatprep.subr.bf16.mxu0 %v1303_v47  ;;  %v2203_v47 = vpack.c.bf16 %v1629_v33, %v1628_v30 }
 0x4bf   : > { %1515 = vmatpush1.bf16.msra.mxu0 %v1302_v38  ;;  %v2299_v38 = vld [vmem:[%s2867_s7 + $0x10] ss:$8 sps:$4 sm:$0xff]  }
 0x4c0   : > { %v1319_v39 = vpop.permute.xlu0 %1318  ;;  %v1321_v40 = vpop.permute.xlu1 %1320  ;;  %v1439_v41 = vld [vmem:[#allocation4 + $0x28] sm:$0xff] }
 0x4c1   : > { %v1322_v42 = vsel %vm529_vm8, %v1317_v21, %v1319_v39  ;;  %v1323_v43 = vsel %vm529_vm8, %v1319_v39, %v1321_v40  ;;  %1329 = vst.msk [vmem:[#allocation4 + $0x58] sm:$0xff] %vm1268_vm7, %v1321_v40  ;;  %1566 = vmatpush1.bf16.msra.mxu1 %v1439_v41  ;;  %v1626_v21 = vld [vmem:[%s2862_s2 + $0x10] sm:$0xff]  ;;  %v2233_v39 = vpack.c.bf16 %v1661_v35, %v1660_v34 }
 0x4c2   : > { %1327 = vst [vmem:[#allocation4 + $0x48] sm:$0xff] %v1322_v42  ;;  %1328 = vst [vmem:[#allocation4 + $0x50] sm:$0xff] %v1323_v43  ;;  %1567 = vmatprep.subr.bf16.mxu1 %v2318_v55  ;;  %1516 = vmatprep.subr.bf16.mxu0 %v1323_v43  ;;  %v2205_v40 = vpack.c.bf16 %v1647_v37, %v1646_v36  ;;  %v1630_v41 = vld [vmem:[%s2862_s2 + $0x30] sm:$0xff]  ;;  %v1648_v43 = vld [vmem:[%s2862_s2 + $0xc0] sm:$0xff] }
 0x4c3   : > { %1517 = vmatpush1.bf16.msra.mxu0 %v1322_v42  ;;  %v1631_v42 = vld [vmem:[%s2862_s2 + $0x38] sm:$0xff] }
 0x4c4   : > { %v1341_v44 = vpop.permute.xlu0 %1340  ;;  %v1339_v45 = vpop.permute.xlu1 %1338  ;;  %v1442_v46 = vld [vmem:[#allocation4 + $0x40] sm:$0xff] }
 0x4c5   : > { %1349 = vst.msk [vmem:[#allocation4 + $0x70] sm:$0xff] %vm1268_vm7, %v1341_v44  ;;  %v1342_v48 = vsel %vm563_vm9, %v1337_v24, %v1339_v45  ;;  %v1343_v49 = vsel %vm563_vm9, %v1339_v45, %v1341_v44  ;;  %1568 = vmatpush1.bf16.msra.mxu1 %v1442_v46  ;;  %v2225_v24 = vpack.c.bf16 %v1657_v17, %v1656_v16  ;;  %v1649_v44 = vld [vmem:[%s2862_s2 + $0xc8] sm:$0xff] }
 0x4c6   : > { %1347 = vst [vmem:[#allocation4 + $0x60] sm:$0xff] %v1342_v48  ;;  %1348 = vst [vmem:[#allocation4 + $0x68] sm:$0xff] %v1343_v49  ;;  %1569 = vmatprep.subr.bf16.mxu1 %v2318_v55  ;;  %1518 = vmatprep.subr.bf16.mxu0 %v1343_v49  ;;  %v2207_v45 = vpack.c.bf16 %v1631_v42, %v1630_v41  ;;  %v2209_v46 = vpack.c.bf16 %v1649_v44, %v1648_v43  ;;  %v1633_v49 = vld [vmem:[%s2862_s2 + $0x48] sm:$0xff] }
 0x4c7   : > { %1519 = vmatpush1.bf16.msra.mxu0 %v1342_v48  ;;  %v1632_v48 = vld [vmem:[%s2862_s2 + $0x40] sm:$0xff] }
 0x4c8   : > { %v1359_v50 = vpop.permute.xlu0 %1358  ;;  %v1361_v51 = vpop.permute.xlu1 %1360  ;;  %v1445_v52 = vld [vmem:[#allocation4 + $0x58] sm:$0xff] }
 0x4c9   : > { %v1362_v53 = vsel %vm596_vm10, %v2655_v23, %v1359_v50  ;;  %v1363_v54 = vsel %vm596_vm10, %v1359_v50, %v1361_v51  ;;  %1369 = vst.msk [vmem:[#allocation4 + $0x88] sm:$0xff] %vm1268_vm7, %v1361_v51  ;;  %1570 = vmatpush1.bf16.msra.mxu1 %v1445_v52  ;;  %v1627_v23 = vld [vmem:[%s2862_s2 + $0x18] sm:$0xff]  ;;  %v2211_v50 = vpack.c.bf16 %v1633_v49, %v1632_v48  ;;  %v1650_v51 = vld [vmem:[%s2862_s2 + $0xd0] sm:$0xff] }
 0x4ca   : > { %1571 = vmatprep.subr.bf16.mxu1 %v2318_v55  ;;  %1520 = vmatprep.subr.bf16.mxu0 %v1363_v54  ;;  %v2199_v29 = vpack.c.bf16 %v1627_v23, %v1626_v21  ;;  %v1651_v52 = vld [vmem:[%s2862_s2 + $0xd8] sm:$0xff]  ;;  %v1634_v54 = vld [vmem:[%s2862_s2 + $0x50] sm:$0xff] }
 0x4cb   : > { %1521 = vmatpush1.bf16.msra.mxu0 %v1362_v53  ;;  %v2213_v53 = vpack.c.bf16 %v1651_v52, %v1650_v51 }
 0x4cc   : > { %v1381_v56 = vpop.permute.xlu0 %1380  ;;  %v1379_v57 = vpop.permute.xlu1 %1378  ;;  %v1448_v58 = vld [vmem:[#allocation4 + $0x70] sm:$0xff] }
 0x4cd   : > { %1389 = vst.msk [vmem:[#allocation4 + $0xa0] sm:$0xff] %vm1268_vm7, %v1381_v56  ;;  %v1382_v60 = vsel %vm630_vm11, %v2659_v26, %v1379_v57  ;;  %v1383_v61 = vsel %vm630_vm11, %v1379_v57, %v1381_v56  ;;  %1572 = vmatpush1.bf16.msra.mxu1 %v1448_v58  ;;  %v1635_v56 = vld [vmem:[%s2862_s2 + $0x58] sm:$0xff]  ;;  %v1652_v58 = vld [vmem:[%s2862_s2 + $0xe0] sm:$0xff] }
 0x4ce   : > { %1573 = vmatprep.subr.bf16.mxu1 %v2318_v55  ;;  %1522 = vmatprep.subr.bf16.mxu0 %v1383_v61  ;;  %v2215_v57 = vpack.c.bf16 %v1635_v56, %v1634_v54 }
 0x4cf   : > { %1523 = vmatpush1.bf16.msra.mxu0 %v1382_v60  ;;  %v1653_v60 = vld [vmem:[%s2862_s2 + $0xe8] sm:$0xff] }
 0x4d0   : > { %v1399_v63 = vpop.permute.xlu0 %1398  ;;  %v1401_v0 = vpop.permute.xlu1 %1400  ;;  %v1451_v1 = vld [vmem:[#allocation4 + $0x88] sm:$0xff]  ;;  %v2217_v61 = vpack.c.bf16 %v1653_v60, %v1652_v58 }
 0x4d1   : > { %v1402_v2 = vsel %vm664_vm12, %v2657_v25, %v1399_v63  ;;  %v1403_v4 = vsel %vm664_vm12, %v1399_v63, %v1401_v0  ;;  %1409 = vst.msk [vmem:[#allocation4 + $0xb8] sm:$0xff] %vm1268_vm7, %v1401_v0  ;;  %1574 = vmatpush1.bf16.msra.mxu1 %v1451_v1  ;;  %v1659_v25 = vld [vmem:[%s2862_s2 + $0x118] sm:$0xff]  ;;  %v1636_v63 = vld [vmem:[%s2862_s2 + $0x60] sm:$0xff]  ;;  %v1637_v0 = vld [vmem:[%s2862_s2 + $0x68] sm:$0xff] }
 0x4d2   : > { %1575 = vmatprep.subr.bf16.mxu1 %v2318_v55  ;;  %1524 = vmatprep.subr.bf16.mxu0 %v1403_v4  ;;  %v2219_v1 = vpack.c.bf16 %v1637_v0, %v1636_v63  ;;  %v1655_v4 = vld [vmem:[%s2862_s2 + $0xf8] sm:$0xff] }
 0x4d3   : > { %1525 = vmatpush1.bf16.msra.mxu0 %v1402_v2  ;;  %v1654_v2 = vld [vmem:[%s2862_s2 + $0xf0] sm:$0xff] }
 0x4d4   : > { %v1421_v5 = vpop.permute.xlu0 %1420  ;;  %v1419_v6 = vpop.permute.xlu1 %1418  ;;  %v1454_v7 = vld [vmem:[#allocation4 + $0xa0] sm:$0xff] }
 0x4d5   : > { %1429 = vst.msk [vmem:[#allocation4 + $0xd0] sm:$0xff] %vm1268_vm7, %v1421_v5  ;;  %v1423_v11 = vsel %vm697_vm13, %v1419_v6, %v1421_v5  ;;  %1576 = vmatpush1.bf16.msra.mxu1 %v1454_v7  ;;  %v1662_v5 = vld [vmem:[%s2862_s2 + $0x130] sm:$0xff]  ;;  %v2221_v7 = vpack.c.bf16 %v1655_v4, %v1654_v2 }
 0x4d6   : > { %1577 = vmatprep.subr.bf16.mxu1 %v2318_v55  ;;  %1526 = vmatprep.subr.bf16.mxu0 %v1423_v11  ;;  %v1639_v11 = vld [vmem:[%s2862_s2 + $0x78] sm:$0xff] }
 0x4d8   : > { %v1417_v14 = vpop.permute.xlu1 %1416  ;;  %v1457_v15 = vld [vmem:[#allocation4 + $0xb8] sm:$0xff] }
 0x4d9   : > { %v1422_v3 = vsel %vm697_vm13, %v1417_v14, %v1419_v6  ;;  %1578 = vmatpush1.bf16.msra.mxu1 %v1457_v15  ;;  %v1663_v6 = vld [vmem:[%s2862_s2 + $0x138] sm:$0xff] }
 0x4da   : > { %1579 = vmatprep.subr.bf16.mxu1 %v2318_v55  ;;  %1527 = vmatpush1.bf16.msra.mxu0 %v1422_v3  ;;  %v1658_v55 = vld [vmem:[%s2862_s2 + $0x110] sm:$0xff]  ;;  %v2237_v9 = vpack.c.bf16 %v1663_v6, %v1662_v5 }
 0x4db   : > { %2194 = vmatprep.subr.bf16.mxu0 %v2193_v12  ;;  %v2229_v31 = vpack.c.bf16 %v1659_v25, %v1658_v55  ;;  %v2223_v12 = vpack.c.bf16 %v1639_v11, %v1638_v8 }
 0x4dc   : > { %v1460_v26 = vld [vmem:[#allocation4 + $0xd0] sm:$0xff] }
 0x4dd   : > { %1580 = vmatpush1.bf16.msra.mxu1 %v1460_v26  ;;  %1543 = vmatmul.mubr.bf16.vlgmr.msra.gmra.mrb[4].mxu0 %v2296_v18 }
 0x4de   : > { %2045 = vmatprep.mubr.msk.bf16.mxu0 %vm1503_vm0, %v2297_v19  ;;  %2196 = vmatpush3.bf16.msra.mxu0 %v2195_v20 }
 0x4df   : > { %2198 = vmatprep.subr.bf16.mxu0 %v2197_v22  ;;  %2226 = vmatprep.subr.bf16.mxu1 %v2225_v24 }
 0x4e0   : > { %1596 = vmatmul.mubr.bf16.vlgmr.msra.gmra.mrb[12].mxu1 %v2296_v18 }
 0x4e1   : > { %2047 = vmatprep.mubr.msk.bf16.mxu1 %vm1503_vm0, %v2297_v19  ;;  %2228 = vmatpush3.bf16.msra.mxu1 %v2225_v24 }
 0x4e2   : > { %2200 = vmatpush3.bf16.msra.mxu0 %v2199_v29  ;;  %2230 = vmatprep.subr.bf16.mxu1 %v2229_v31 }
 0x4e3   : > { %2202 = vmatprep.subr.bf16.mxu0 %v2201_v32 }
 0x4e5   : > { %1553 = vmatmul.mubr.bf16.gmra.mrb[8].mxu0 %v2299_v38  ;;  %2232 = vmatpush3.bf16.msra.mxu1 %v2229_v31  ;;  %v1468_v59 = vpop.permute.xlu0 %1467 }
 0x4e6   : > { %2204 = vmatpush3.bf16.msra.mxu0 %v2203_v47  ;;  %2234 = vmatprep.subr.bf16.mxu1 %v2233_v39 }
 0x4e7   : > { %2206 = vmatprep.subr.bf16.mxu0 %v2205_v40 }
 0x4e8   : > { %1604 = vmatmul.mubr.bf16.gmra.mrb[16].mxu1 %v2299_v38 }
 0x4e9   : > { %2236 = vmatpush3.bf16.msra.mxu1 %v2233_v39  ;;  %v1473_v15 = vpop.permute.xlu1 %1472  ;;  %v1478_v29 = vpop.permute.xlu0 %1477 }
 0x4ea   : > { %2208 = vmatpush3.bf16.msra.mxu0 %v2207_v45  ;;  %2238 = vmatprep.subr.bf16.mxu1 %v2237_v9 }
 0x4eb   : > { %2210 = vmatprep.subr.bf16.mxu0 %v2209_v46 }
 0x4ed   : > { %2240 = vmatpush3.bf16.msra.mxu1 %v2237_v9  ;;  %v1483_v35 = vpop.permute.xlu1 %1482 }
 0x4ee   : > { %2212 = vmatpush3.bf16.msra.mxu0 %v2211_v50  ;;  %2174 = vmatprep.subr.msk.mxu1 %vm1121_vm14, %v1664_v10 }
 0x4ef   : > { %2214 = vmatprep.subr.bf16.mxu0 %v2213_v53  ;;  %v1850_v53 = vld [vmem:[%s2869_s9] sm:$0xff] }
 0x4f1   : > { %2175 = vmatpush3.msk.msra.mxu1 %vm1121_vm14, %v1664_v10 }
 0x4f2   : > { %2216 = vmatpush3.bf16.msra.mxu0 %v2215_v57 }
 0x4f3   : > { %2218 = vmatprep.subr.bf16.mxu0 %v2217_v61 }
 0x4f6   : > { %2220 = vmatpush3.bf16.msra.mxu0 %v2219_v1 }
 0x4f7   : > { %2222 = vmatprep.subr.bf16.mxu0 %v2221_v7 }
 0x4fa   : > { %2224 = vmatpush3.bf16.msra.mxu0 %v2223_v12 }
 0x5b0   : > { %v1544_v13 = vpop.f32.mrb[4].mxu0 }
 0x5b1   : > { %v1545_v62 = vadd.f32 %v1544_v13, %v1468_v59  ;;  %v1546_v14 = vpop.f32.mrb[5].mxu0 }
 0x5b2   : > { %v1547_v16 = vadd.f32 %v1546_v14, %v1468_v59  ;;  %v1548_v17 = vpop.f32.mrb[6].mxu0  ;;  %v1851_v14 = vld [vmem:[%s2869_s9 + $0x8] sm:$0x3] }
 0x5b3   : > { %v1597_v3 = vpop.f32.mrb[12].mxu1  ;;  %v1550_v18 = vpop.f32.mrb[7].mxu0  ;;  %v1612_v24 = vmax.f32 %v1545_v62, 0.0  ;;  %v1549_v55 = vadd.f32 %v1548_v17, %v1473_v15 }
 0x5b4   : > { %v1598_v19 = vadd.f32 %v1597_v3, %v1468_v59  ;;  %v1599_v20 = vpop.f32.mrb[13].mxu1  ;;  %v1613_v21 = vmax.f32 %v1547_v16, 0.0  ;;  %v1551_v22 = vadd.f32 %v1550_v18, %v1473_v15  ;;  %v1852_v16 = vld [vmem:[%s2870_s10] sm:$0xff] }
 0x5b5   : > { %v1600_v23 = vpop.f32.mrb[14].mxu1  ;;  %v1615_v32 = vmax.f32 %v1549_v55, 0.0 }
 0x5b6   : > { %v1614_v25 = vmax.f32 %v1598_v19, 0.0  ;;  %v1601_v26 = vadd.f32 %v1600_v23, %v1473_v15  ;;  %v1602_v27 = vpop.f32.mrb[15].mxu1  ;;  %v1616_v28 = vmax.f32 %v1551_v22, 0.0  ;;  %1744 = vmatprep.mubr.f32.mxu0 %v1613_v21  ;;  %v1853_v15 = vld [vmem:[%s2870_s10 + $0x8] sm:$0x3] }
 0x5b7   : > { %1745 = vmatmul.mubr.f32.vlgmr.msra.gmra.mrb[12].mxu0 %v1612_v24 }
 0x5b8   : > { %v1617_v30 = vmax.f32 %v1601_v26, 0.0  ;;  %2176 = vmatprep.mubr.msk.f32.mxu1 %vm1268_vm7, %v1614_v25  ;;  %v1554_v31 = vpop.f32.mrb[8].mxu0  ;;  %1749 = vmatprep.mubr.f32.mxu0 %v1616_v28 }
 0x5b9   : > { %v1555_v33 = vadd.f32 %v1554_v31, %v1478_v29  ;;  %v1556_v34 = vpop.f32.mrb[9].mxu0 }
 0x5ba   : > { %2177 = vmatmul.mubr.msk.f32.vlgmr.msra.gmra.mrb[20].mxu1 %vm1268_vm7, %v1617_v30  ;;  %v1557_v36 = vadd.f32 %v1556_v34, %v1478_v29  ;;  %v1558_v37 = vpop.f32.mrb[10].mxu0 }
 0x5bb   : > { %v1605_v38 = vpop.f32.mrb[16].mxu1  ;;  %v1560_v47 = vpop.f32.mrb[11].mxu0  ;;  %1750 = vmatmul.mubr.f32.gmra.mrb[14].mxu0 %v1615_v32  ;;  %v1618_v44 = vmax.f32 %v1555_v33, 0.0  ;;  %v1559_v45 = vadd.f32 %v1558_v37, %v1483_v35 }
 0x5bc   : > { %v1606_v39 = vadd.f32 %v1605_v38, %v1478_v29  ;;  %v1607_v40 = vpop.f32.mrb[17].mxu1  ;;  %v1619_v41 = vmax.f32 %v1557_v36, 0.0  ;;  %v1561_v42 = vadd.f32 %v1560_v47, %v1483_v35 }
 0x5bd   : > { %v1608_v43 = vpop.f32.mrb[18].mxu1  ;;  %v1621_v52 = vmax.f32 %v1559_v45, 0.0 }
 0x5be   : > { %v1620_v46 = vmax.f32 %v1606_v39, 0.0  ;;  %v1609_v48 = vadd.f32 %v1608_v43, %v1483_v35  ;;  %v1622_v49 = vmax.f32 %v1561_v42, 0.0  ;;  %v1610_v50 = vpop.f32.mrb[19].mxu1  ;;  %1754 = vmatprep.mubr.f32.mxu0 %v1619_v41 }
 0x5bf   : > { %1755 = vmatmul.mubr.f32.gmra.mrb[16].mxu0 %v1618_v44 }
 0x5c0   : > { %v1623_v51 = vmax.f32 %v1609_v48, 0.0  ;;  %2179 = vmatprep.mubr.msk.f32.mxu1 %vm1268_vm7, %v1620_v46  ;;  %1759 = vmatprep.mubr.f32.mxu0 %v1622_v49 }
 0x5c2   : > { %2180 = vmatmul.mubr.msk.f32.gmra.mrb[22].mxu1 %vm1268_vm7, %v1623_v51 }
 0x5c3   : > { %1760 = vmatmul.mubr.f32.gmra.mrb[18].mxu0 %v1621_v52 }
 0x5c4   : > { %2190 = vmatprep.mubr.msk.f32.mxu0 %vm1854_vm3, %v1850_v53 }
 0x68a   : > { %v2103_v54 = vpop.f32.mrb[12].mxu0 }
 0x68b   : > { %v2104_v56 = vpop.f32.mrb[13].mxu0 }
 0x68c   : > { %v2105_v57 = vadd.f32 %v2104_v56, %v2103_v54 }
 0x68d   : > { %v2178_v58 = vpop.f32.mrb[20].mxu1 }
 0x68e   : > { %v1831_v60 = vpop.f32.mrb[21].mxu1  ;;  %v2106_v61 = vpop.f32.mrb[14].mxu0 }
 0x68f   : > { %v1832_v63 = vadd.f32 %v2105_v57, %v1831_v60  ;;  %v2107_v0 = vpop.f32.mrb[15].mxu0 }
 0x690   : > { %v2108_v1 = vadd.f32 %v2107_v0, %v2106_v61 }
 0x692   : > { %v1837_v2 = vadd.f32 %v2178_v58, %v2108_v1  ;;  %v2109_v4 = vpop.f32.mrb[16].mxu0 }
 0x693   : > { %v2110_v5 = vpop.f32.mrb[17].mxu0 }
 0x694   : > { %v2111_v6 = vadd.f32 %v2110_v5, %v2109_v4  ;;  %v2241_v7 = vpack.c.bf16 %v1837_v2, %v1832_v63 }
 0x695   : > { %v2181_v8 = vpop.f32.mrb[22].mxu1 }
 0x696   : > { %v1841_v9 = vpop.f32.mrb[23].mxu1  ;;  %v2112_v11 = vpop.f32.mrb[18].mxu0  ;;  %2242 = vmatprep.subr.bf16.mxu0 %v2241_v7 }
 0x697   : > { %v1842_v10 = vadd.f32 %v2111_v6, %v1841_v9  ;;  %v2113_v12 = vpop.f32.mrb[19].mxu0  ;;  %2244 = vmatpush3.bf16.msra.mxu0 %v2241_v7 }
 0x698   : > { %v2114_v59 = vadd.f32 %v2113_v12, %v2112_v11 }
 0x69a   : > { %v1847_v13 = vadd.f32 %v2181_v8, %v2114_v59 }
 0x69c   : > { %v2245_v62 = vpack.c.bf16 %v1847_v13, %v1842_v10 }
 0x69e   : > { %2246 = vmatprep.subr.bf16.mxu0 %v2245_v62 }
 0x69f   : > { %2248 = vmatpush3.bf16.msra.mxu0 %v2245_v62 }
 0x6a2   : > { %2191 = vmatmul.mubr.msk.f32.vlgmr.msra.gmra.mrb[20].mxu0 %vm1854_vm3, %v1851_v14 }
 0x775   : > { %v2192_v17 = vpop.f32.mrb[20].mxu0 }
 0x776   : > { %v1933_v3 = vadd.f32 %v2192_v17, %v1853_v15  ;;  %v1927_v18 = vpop.f32.mrb[21].mxu0 }
 0x777   : > { %v1928_v19 = vadd.f32 %v1927_v18, %v1852_v16 }
 0x778   : > { %1939 = vst.msk [vmem:[%s386_s30 + $0x8] sm:$0x3] %vm1938_vm4, %v1933_v3 }
 0x779   : > { %1937 = vst.msk [vmem:[%s386_s30] sm:$0xff] %vm1936_vm6, %v1928_v19 }
 0x77a PF: > { %s21_s17 = sadd.s32 1, %s2306_s17  }
 0x77b   : > { %p18_p4 = scmp.ge.s32.totalorder %s21_s17, 4  }
 0x77d   :  { %20 = sbr.rel (!%p18_p4) target bundleno = 1 (0x1), region = 94 }

</bundles_post_ra>
